<compile_context>
chip_gen: v6e
topology: v6e:2x2x1
jax: 0.10.0
libtpu: 0.0.40
codegen_flags: <defaults>
</compile_context>

<pallas_src>
import jax
import jax.numpy as jnp
from jax import lax
from jax.experimental import pallas as pl
from jax.experimental.pallas import tpu as pltpu


# --------------------------------------------------------------------------
# Fused whole-network kernel
# --------------------------------------------------------------------------
def _graph_network_kernel(edge_w_ref, node_wc_ref,          # SMEM: (L, 4), (L, 2)
                          x_ref, e_ref,                      # VMEM: (T, N, F), (T, N, N, F)
                          w1t_ref, gamma_ref, beta_ref,      # VMEM: (L, F, F), (L, 1, F), (L, 1, F)
                          out_ref):                          # VMEM: (L+1, T, 2, N, N)
    T, N, F = x_ref.shape
    L = w1t_ref.shape[0]

    x = x_ref[...].astype(jnp.float32)                       # (T, N, F)
    e = e_ref[...].astype(jnp.float32)                       # (T, N, N, F)

    # Hoisted once per invocation and reused by every layer (JAX does not CSE broadcast_in_dim).
    ii = lax.broadcasted_iota(jnp.int32, (N, N), 0)
    jj = lax.broadcasted_iota(jnp.int32, (N, N), 1)
    eye_f = (ii == jj).astype(jnp.float32)                   # (N, N)   diagonal selector
    offdiag = (ii != jj).astype(jnp.float32)[:, :, None]     # (N, N, 1) zero-the-diagonal mask

    def write_sim(xc, slot):
        # cosine similarity -> 2 channels -> clamp(0,1); one full-slot store.
        x_ij = jnp.einsum("tnf,tmf->tnm", xc, xc,
                          preferred_element_type=jnp.float32)             # (T, N, N) on the MXU
        nrm_col = jnp.sqrt(jnp.sum(xc * xc, axis=-1, keepdims=True))      # (T, N, 1)
        # Row-form norms recovered from the diagonal of x@x^T (x_ij[t,j,j] == |x_j|^2):
        # avoids a pathological size-1-contraction MXU matmul and a lane<->sublane transpose.
        nrm_row = jnp.sqrt(jnp.sum(x_ij * eye_f, axis=1, keepdims=True))  # (T, 1, N)
        denom = nrm_col * nrm_row + 1e-6                                  # VPU broadcast outer product
        sim = x_ij * pl.reciprocal(denom, approx=True)                    # EUP reciprocal (free slot)
        out_ref[slot] = jnp.clip(jnp.stack([sim, 1.0 - sim], axis=1), 0.0, 1.0)

    write_sim(x, 0)

    # Static (unrolled) loop over graph layers: per-layer weights are statically indexed.
    for l in range(L):
        # ---- EdgeUpdateNetwork: 1x1x1 Conv3d(3->1,bias) over {x_i, x_i - x_j, edge}, tanh, mask
        w0 = edge_w_ref[l, 0]
        w1 = edge_w_ref[l, 1]
        w2 = edge_w_ref[l, 2]
        b = edge_w_ref[l, 3]
        sx_i = (w0 + w1) * x                                  # (T, N, F)   hoisted, reused over all j
        sx_j = w1 * x                                         # (T, N, F)   hoisted, reused over all i
        pre = sx_i[:, :, None, :] - sx_j[:, None, :, :] + (w2 * e + b)    # (T, N, N, F)
        e = jnp.tanh(pre) * offdiag                           # (T, N, N, F)

        # ---- NodeUpdateNetwork (edge block is still resident in VMEM -> aggr computed here)
        aggr = jnp.sum(e, axis=2)                             # (T, N, F)  sum over node_j
        h = node_wc_ref[l, 0] * x + node_wc_ref[l, 1] * aggr  # 1x1 Conv2d(2->1, no bias)
        h = jnp.where(h >= 0, h, 0.01 * h)                    # LeakyReLU(0.01)

        # 1x1 Conv1d(F->F, no bias): z[t,n,g] = sum_f h[t,n,f] * W1[g,f]  (W1 passed pre-transposed)
        z = jnp.dot(h.reshape(T * N, F), w1t_ref[l],
                    preferred_element_type=jnp.float32).reshape(T, N, F)

        # BatchNorm1d(F): per-feature stats over (task, node), biased variance, eps=1e-5
        mean = jnp.mean(z, axis=(0, 1), keepdims=True)
        var = jnp.mean((z - mean) ** 2, axis=(0, 1), keepdims=True)
        zhat = (z - mean) * lax.rsqrt(var + 1e-5)
        zo = gamma_ref[l].reshape(1, 1, F) * zhat + beta_ref[l].reshape(1, 1, F)
        x = jnp.where(zo >= 0, zo, 0.01 * zo)                 # LeakyReLU(0.01)

        write_sim(x, l + 1)


def graph_network_forward(node_feats, edge_feats, params):
    """Full GraphNetwork forward in a single fused pallas_call.  Returns the edge_feat_list."""
    T, N, F = node_feats.shape
    L = len(params)
    edge_w = jnp.stack([p["edge_w"] for p in params]).astype(jnp.float32)    # (L, 4)
    node_wc = jnp.stack([p["node_wc"] for p in params]).astype(jnp.float32)  # (L, 2)
    w1t = jnp.stack([p["w1t"] for p in params]).astype(jnp.float32)          # (L, F, F)
    gamma = jnp.stack([p["bn_gamma"] for p in params]).astype(jnp.float32)   # (L, 1, F)
    beta = jnp.stack([p["bn_beta"] for p in params]).astype(jnp.float32)     # (L, 1, F)

    sims = pl.pallas_call(
        _graph_network_kernel,
        out_shape=jax.ShapeDtypeStruct((L + 1, T, 2, N, N), jnp.float32),
        grid=(1,),
        in_specs=[
            pl.BlockSpec(memory_space=pltpu.MemorySpace.SMEM),        # edge conv3d weights (L, 4)
            pl.BlockSpec(memory_space=pltpu.MemorySpace.SMEM),        # node conv2d weights (L, 2)
            pl.BlockSpec((T, N, F), lambda i: (0, 0, 0)),             # node feats
            pl.BlockSpec((T, N, N, F), lambda i: (0, 0, 0, 0)),       # edge feats
            pl.BlockSpec((L, F, F), lambda i: (0, 0, 0)),             # conv1d weight, transposed
            pl.BlockSpec((L, 1, F), lambda i: (0, 0, 0)),             # bn gamma
            pl.BlockSpec((L, 1, F), lambda i: (0, 0, 0)),             # bn beta
        ],
        out_specs=pl.BlockSpec((L + 1, T, 2, N, N), lambda i: (0, 0, 0, 0, 0)),
        compiler_params=pltpu.CompilerParams(dimension_semantics=("arbitrary",)),
    )(edge_w, node_wc, node_feats, edge_feats, w1t, gamma, beta)

    return [sims[l] for l in range(L + 1)]


def init_params(key, num_layers, num_node_feats):
    """Deterministic synthetic parameters (shapes match the nn.Module __init__)."""
    params = []
    for l in range(num_layers):
        k = jax.random.fold_in(key, l)
        k1, k2, k3, k4 = jax.random.split(k, 4)
        # EdgeUpdateNetwork: Conv3d(3 -> 1, kernel 1, bias) => 3 weights + 1 bias
        edge_w = jnp.concatenate(
            [0.5 * jax.random.normal(k1, (3,)), 0.1 * jax.random.normal(k2, (1,))]
        ).astype(jnp.float32)
        # NodeUpdateNetwork: Conv2d(2 -> 1, kernel 1, no bias)
        node_wc = (0.5 * jax.random.normal(k3, (2,))).astype(jnp.float32)
        # NodeUpdateNetwork: Conv1d(F -> F, kernel 1, no bias), weight shape (out, in)
        w1 = (jax.random.normal(k4, (num_node_feats, num_node_feats))
              / jnp.sqrt(num_node_feats)).astype(jnp.float32)
        gamma = jnp.ones((1, num_node_feats), jnp.float32)   # BatchNorm1d defaults
        beta = jnp.zeros((1, num_node_feats), jnp.float32)
        params.append(dict(edge_w=edge_w, node_wc=node_wc, w1t=w1.T,
                           bn_gamma=gamma, bn_beta=beta))
    return params


# --------------------------------------------------------------------------
# Pure-JAX reference (mirrors the PyTorch forward) for a correctness check
# --------------------------------------------------------------------------
def _ref_sim(x):
    x_ij = jnp.einsum("tnf,tmf->tnm", x, x)
    nrm = jnp.sqrt(jnp.sum(x * x, axis=-1, keepdims=True))
    denom = jnp.einsum("tni,tmi->tnm", nrm, nrm) + 1e-6
    sim = x_ij / denom
    return jnp.clip(jnp.stack([sim, 1.0 - sim], axis=1), 0.0, 1.0)


def ref_forward(node_feats, edge_feats, params):
    outs = [_ref_sim(node_feats)]
    x, e = node_feats, edge_feats
    for p in params:
        w0, w1, w2, b = p["edge_w"]
        xi = x[:, :, None, :]
        xj = x[:, None, :, :]
        act = jnp.tanh(w0 * xi + w1 * (xi - xj) + w2 * e + b)
        N = x.shape[1]
        e = act * (1.0 - jnp.eye(N))[None, :, :, None]
        aggr = jnp.sum(e, axis=2)
        h = p["node_wc"][0] * x + p["node_wc"][1] * aggr
        h = jnp.where(h >= 0, h, 0.01 * h)
        z = jnp.einsum("tnf,fg->tng", h, p["w1t"])
        mean = jnp.mean(z, axis=(0, 1), keepdims=True)
        var = jnp.mean((z - mean) ** 2, axis=(0, 1), keepdims=True)
        zhat = (z - mean) / jnp.sqrt(var + 1e-5)
        zo = p["bn_gamma"].reshape(1, 1, -1) * zhat + p["bn_beta"].reshape(1, 1, -1)
        x = jnp.where(zo >= 0, zo, 0.01 * zo)
        outs.append(_ref_sim(x))
    return outs


if __name__ == "__main__":
    # num_tasks=2, num_samples=8, num_node_feats=32, num_graph_layers=2  (T, N, F > 1 so
    # the PyTorch .squeeze() in NodeUpdateNetwork removes exactly the channel dim).
    T, N, F = 2, 8, 32
    num_graph_layers = 2

    key = jax.random.PRNGKey(0)
    kx, ke, kp = jax.random.split(key, 3)
    node_feats = jax.random.normal(kx, (T, N, F), dtype=jnp.float32)
    edge_feats = jax.random.normal(ke, (T, N, N, F), dtype=jnp.float32)
    params = init_params(kp, num_graph_layers, F)

    fwd = jax.jit(graph_network_forward)
    outs = jax.block_until_ready(fwd(node_feats, edge_feats, params))

    refs = ref_forward(node_feats, edge_feats, params)
    for o, r in zip(outs, refs):
        assert o.shape == r.shape, (o.shape, r.shape)
        if not jnp.allclose(o, r, atol=1e-2, rtol=1e-2):
            raise SystemExit(
                "mismatch: max abs diff %e" % float(jnp.max(jnp.abs(o - r))))

    print("KERNEL_OK")
</pallas_src>

<mosaic_0001>
module attributes {stable_mosaic.version = 11 : i64} {
  func.func @_graph_network_kernel(%arg0: i32, %arg1: memref<2x4xf32, #tpu.memory_space<smem>>, %arg2: memref<2x2xf32, #tpu.memory_space<smem>>, %arg3: memref<2x8x32xf32, #tpu.memory_space<vmem>>, %arg4: memref<2x8x8x32xf32, #tpu.memory_space<vmem>>, %arg5: memref<2x32x32xf32, #tpu.memory_space<vmem>>, %arg6: memref<2x1x32xf32, #tpu.memory_space<vmem>>, %arg7: memref<2x1x32xf32, #tpu.memory_space<vmem>>, %arg8: memref<3x2x2x8x8xf32, #tpu.memory_space<vmem>>) attributes {dimension_semantics = [#tpu.dimension_semantics<arbitrary>], iteration_bounds = array<i64: 1>, scalar_prefetch = 0 : i64, scratch_operands = 0 : i64, tpu.core_type = #tpu.core_type<tc>, window_params = [{transform_indices = @transform_0, window_bounds = array<i64: 2, 4>}, {transform_indices = @transform_1, window_bounds = array<i64: 2, 2>}, {pipeline_mode = #tpu.pipeline_mode<synchronous>, transform_indices = @transform_2, window_bounds = array<i64: 2, 8, 32>}, {pipeline_mode = #tpu.pipeline_mode<synchronous>, transform_indices = @transform_3, window_bounds = array<i64: 2, 8, 8, 32>}, {pipeline_mode = #tpu.pipeline_mode<synchronous>, transform_indices = @transform_4, window_bounds = array<i64: 2, 32, 32>}, {pipeline_mode = #tpu.pipeline_mode<synchronous>, transform_indices = @transform_5, window_bounds = array<i64: 2, 1, 32>}, {pipeline_mode = #tpu.pipeline_mode<synchronous>, transform_indices = @transform_6, window_bounds = array<i64: 2, 1, 32>}, {pipeline_mode = #tpu.pipeline_mode<synchronous>, transform_indices = @transform_7, window_bounds = array<i64: 3, 2, 2, 8, 8>}]} {
    %c0 = arith.constant 0 : index
    %c0_0 = arith.constant 0 : index
    %c0_1 = arith.constant 0 : index
    %0 = vector.load %arg3[%c0, %c0_0, %c0_1] : memref<2x8x32xf32, #tpu.memory_space<vmem>>, vector<2x8x32xf32>
    %c0_2 = arith.constant 0 : index
    %c0_3 = arith.constant 0 : index
    %c0_4 = arith.constant 0 : index
    %c0_5 = arith.constant 0 : index
    %1 = vector.load %arg4[%c0_2, %c0_3, %c0_4, %c0_5] : memref<2x8x8x32xf32, #tpu.memory_space<vmem>>, vector<2x8x8x32xf32>
    %2 = tpu.iota {dimensions = array<i32: 0>} : vector<8x8xi32>
    %3 = tpu.iota {dimensions = array<i32: 1>} : vector<8x8xi32>
    %4 = arith.cmpi eq, %2, %3 : vector<8x8xi32>
    %5 = arith.extui %4 : vector<8x8xi1> to vector<8x8xi32>
    %6 = arith.sitofp %5 : vector<8x8xi32> to vector<8x8xf32>
    %7 = arith.cmpi ne, %2, %3 : vector<8x8xi32>
    %8 = arith.extui %7 : vector<8x8xi1> to vector<8x8xi32>
    %9 = arith.sitofp %8 : vector<8x8xi32> to vector<8x8xf32>
    %10 = vector.shape_cast %9 : vector<8x8xf32> to vector<8x8x1xf32>
    "tpu.trace_start"() <{level = 10 : i32, message = "tnf,tmf->tnm"}> : () -> ()
    %cst = arith.constant dense<0.000000e+00> : vector<2x8x8xf32>
    %11 = tpu.matmul %0, %0, %cst {dimension_numbers = #tpu.dot_dimension_numbers<[2], [2], [1], [1], [0, 0, 0, 1, 1, 1], [0], [0]>} : vector<2x8x32xf32>, vector<2x8x32xf32>, vector<2x8x8xf32> -> vector<2x8x8xf32>
    "tpu.trace_stop"() : () -> ()
    %12 = arith.mulf %0, %0 : vector<2x8x32xf32>
    %cst_6 = arith.constant dense<0.000000e+00> : vector<2x8xf32>
    %13 = vector.multi_reduction <add>, %12, %cst_6 [2] : vector<2x8x32xf32> to vector<2x8xf32>
    %14 = vector.shape_cast %13 : vector<2x8xf32> to vector<2x8x1xf32>
    %15 = math.sqrt %14 : vector<2x8x1xf32>
    %16 = vector.shape_cast %6 : vector<8x8xf32> to vector<1x8x8xf32>
    %17 = vector.broadcast %16 : vector<1x8x8xf32> to vector<2x8x8xf32>
    %18 = arith.mulf %11, %17 : vector<2x8x8xf32>
    %cst_7 = arith.constant dense<0.000000e+00> : vector<2x8xf32>
    %19 = vector.multi_reduction <add>, %18, %cst_7 [1] : vector<2x8x8xf32> to vector<2x8xf32>
    %20 = vector.shape_cast %19 : vector<2x8xf32> to vector<2x1x8xf32>
    %21 = math.sqrt %20 : vector<2x1x8xf32>
    %22 = vector.broadcast %15 : vector<2x8x1xf32> to vector<2x8x8xf32>
    %23 = vector.broadcast %21 : vector<2x1x8xf32> to vector<2x8x8xf32>
    %24 = arith.mulf %22, %23 : vector<2x8x8xf32>
    %cst_8 = arith.constant 9.99999997E-7 : f32
    %25 = vector.broadcast %cst_8 : f32 to vector<2x8x8xf32>
    %26 = arith.addf %24, %25 : vector<2x8x8xf32>
    %27 = tpu.reciprocal %26 {approx = true} : vector<2x8x8xf32> -> vector<2x8x8xf32>
    %28 = arith.mulf %11, %27 : vector<2x8x8xf32>
    %cst_9 = arith.constant 1.000000e+00 : f32
    %29 = vector.broadcast %cst_9 : f32 to vector<2x8x8xf32>
    %30 = arith.subf %29, %28 : vector<2x8x8xf32>
    %31 = vector.shape_cast %28 : vector<2x8x8xf32> to vector<2x1x8x8xf32>
    %32 = vector.shape_cast %30 : vector<2x8x8xf32> to vector<2x1x8x8xf32>
    %33 = tpu.concatenate %31, %32 in 1 : vector<2x1x8x8xf32>, vector<2x1x8x8xf32> -> vector<2x2x8x8xf32>
    %cst_10 = arith.constant 0.000000e+00 : f32
    %cst_11 = arith.constant 1.000000e+00 : f32
    %34 = vector.broadcast %cst_10 : f32 to vector<2x2x8x8xf32>
    %35 = arith.maximumf %34, %33 : vector<2x2x8x8xf32>
    %36 = vector.broadcast %cst_11 : f32 to vector<2x2x8x8xf32>
    %37 = arith.minimumf %36, %35 : vector<2x2x8x8xf32>
    %c0_12 = arith.constant 0 : index
    %c0_13 = arith.constant 0 : index
    %c0_14 = arith.constant 0 : index
    %c0_15 = arith.constant 0 : index
    %c0_16 = arith.constant 0 : index
    %38 = vector.load %arg8[%c0_12, %c0_13, %c0_14, %c0_15, %c0_16] : memref<3x2x2x8x8xf32, #tpu.memory_space<vmem>>, vector<1x2x2x8x8xf32>
    %39 = vector.shape_cast %38 : vector<1x2x2x8x8xf32> to vector<2x2x8x8xf32>
    %40 = vector.shape_cast %37 : vector<2x2x8x8xf32> to vector<1x2x2x8x8xf32>
    tpu.vector_store %arg8[%c0_12, %c0_13, %c0_14, %c0_15, %c0_16], %40 {strides = array<i32>} : memref<3x2x2x8x8xf32, #tpu.memory_space<vmem>>, vector<1x2x2x8x8xf32>,
    %c0_17 = arith.constant 0 : index
    %c0_18 = arith.constant 0 : index
    %41 = memref.load %arg1[%c0_17, %c0_18] : memref<2x4xf32, #tpu.memory_space<smem>>
    %c0_19 = arith.constant 0 : index
    %c1 = arith.constant 1 : index
    %42 = memref.load %arg1[%c0_19, %c1] : memref<2x4xf32, #tpu.memory_space<smem>>
    %c0_20 = arith.constant 0 : index
    %c2 = arith.constant 2 : index
    %43 = memref.load %arg1[%c0_20, %c2] : memref<2x4xf32, #tpu.memory_space<smem>>
    %c0_21 = arith.constant 0 : index
    %c3 = arith.constant 3 : index
    %44 = memref.load %arg1[%c0_21, %c3] : memref<2x4xf32, #tpu.memory_space<smem>>
    %45 = arith.addf %41, %42 : f32
    %46 = vector.broadcast %45 : f32 to vector<2x8x32xf32>
    %47 = arith.mulf %46, %0 : vector<2x8x32xf32>
    %48 = vector.broadcast %42 : f32 to vector<2x8x32xf32>
    %49 = arith.mulf %48, %0 : vector<2x8x32xf32>
    %50 = vector.shape_cast %47 : vector<2x8x32xf32> to vector<2x8x1x32xf32>
    %51 = vector.shape_cast %49 : vector<2x8x32xf32> to vector<2x1x8x32xf32>
    %52 = vector.broadcast %50 : vector<2x8x1x32xf32> to vector<2x8x8x32xf32>
    %53 = vector.broadcast %51 : vector<2x1x8x32xf32> to vector<2x8x8x32xf32>
    %54 = arith.subf %52, %53 : vector<2x8x8x32xf32>
    %55 = vector.broadcast %43 : f32 to vector<2x8x8x32xf32>
    %56 = arith.mulf %55, %1 : vector<2x8x8x32xf32>
    %57 = vector.broadcast %44 : f32 to vector<2x8x8x32xf32>
    %58 = arith.addf %56, %57 : vector<2x8x8x32xf32>
    %59 = arith.addf %54, %58 : vector<2x8x8x32xf32>
    %60 = math.tanh %59 : vector<2x8x8x32xf32>
    %61 = vector.shape_cast %10 : vector<8x8x1xf32> to vector<1x8x8x1xf32>
    %62 = vector.broadcast %61 : vector<1x8x8x1xf32> to vector<2x8x8x32xf32>
    %63 = arith.mulf %60, %62 : vector<2x8x8x32xf32>
    %cst_22 = arith.constant dense<0.000000e+00> : vector<2x8x32xf32>
    %64 = vector.multi_reduction <add>, %63, %cst_22 [2] : vector<2x8x8x32xf32> to vector<2x8x32xf32>
    %c0_23 = arith.constant 0 : index
    %c0_24 = arith.constant 0 : index
    %65 = memref.load %arg2[%c0_23, %c0_24] : memref<2x2xf32, #tpu.memory_space<smem>>
    %66 = vector.broadcast %65 : f32 to vector<2x8x32xf32>
    %67 = arith.mulf %66, %0 : vector<2x8x32xf32>
    %c0_25 = arith.constant 0 : index
    %c1_26 = arith.constant 1 : index
    %68 = memref.load %arg2[%c0_25, %c1_26] : memref<2x2xf32, #tpu.memory_space<smem>>
    %69 = vector.broadcast %68 : f32 to vector<2x8x32xf32>
    %70 = arith.mulf %69, %64 : vector<2x8x32xf32>
    %71 = arith.addf %67, %70 : vector<2x8x32xf32>
    %cst_27 = arith.constant 0.000000e+00 : f32
    %72 = vector.broadcast %cst_27 : f32 to vector<2x8x32xf32>
    %73 = arith.cmpf oge, %71, %72 : vector<2x8x32xf32>
    %cst_28 = arith.constant 0.00999999977 : f32
    %74 = vector.broadcast %cst_28 : f32 to vector<2x8x32xf32>
    %75 = arith.mulf %74, %71 : vector<2x8x32xf32>
    %76 = arith.select %73, %71, %75 : vector<2x8x32xi1>, vector<2x8x32xf32>
    %77 = vector.shape_cast %76 : vector<2x8x32xf32> to vector<16x32xf32>
    %c0_29 = arith.constant 0 : index
    %c0_30 = arith.constant 0 : index
    %c0_31 = arith.constant 0 : index
    %78 = vector.load %arg5[%c0_29, %c0_30, %c0_31] : memref<2x32x32xf32, #tpu.memory_space<vmem>>, vector<1x32x32xf32>
    %79 = vector.shape_cast %78 : vector<1x32x32xf32> to vector<32x32xf32>
    %cst_32 = arith.constant dense<0.000000e+00> : vector<16x32xf32>
    %80 = tpu.matmul %77, %79, %cst_32 {dimension_numbers = #tpu.dot_dimension_numbers<[1], [0], [0], [1], [0, 0, 1, 1], [], []>} : vector<16x32xf32>, vector<32x32xf32>, vector<16x32xf32> -> vector<16x32xf32>
    %81 = vector.shape_cast %80 : vector<16x32xf32> to vector<2x8x32xf32>
    %cst_33 = arith.constant dense<0.000000e+00> : vector<32xf32>
    %82 = vector.multi_reduction <add>, %81, %cst_33 [0, 1] : vector<2x8x32xf32> to vector<32xf32>
    %83 = vector.shape_cast %82 : vector<32xf32> to vector<1x1x32xf32>
    %cst_34 = arith.constant 1.600000e+01 : f32
    %84 = vector.broadcast %cst_34 : f32 to vector<1x1x32xf32>
    %85 = arith.divf %83, %84 : vector<1x1x32xf32>
    %86 = vector.broadcast %85 : vector<1x1x32xf32> to vector<2x8x32xf32>
    %87 = arith.subf %81, %86 : vector<2x8x32xf32>
    %88 = arith.mulf %87, %87 : vector<2x8x32xf32>
    %cst_35 = arith.constant dense<0.000000e+00> : vector<32xf32>
    %89 = vector.multi_reduction <add>, %88, %cst_35 [0, 1] : vector<2x8x32xf32> to vector<32xf32>
    %90 = vector.shape_cast %89 : vector<32xf32> to vector<1x1x32xf32>
    %cst_36 = arith.constant 1.600000e+01 : f32
    %91 = vector.broadcast %cst_36 : f32 to vector<1x1x32xf32>
    %92 = arith.divf %90, %91 : vector<1x1x32xf32>
    %93 = vector.broadcast %85 : vector<1x1x32xf32> to vector<2x8x32xf32>
    %94 = arith.subf %81, %93 : vector<2x8x32xf32>
    %cst_37 = arith.constant 9.99999974E-6 : f32
    %95 = vector.broadcast %cst_37 : f32 to vector<1x1x32xf32>
    %96 = arith.addf %92, %95 : vector<1x1x32xf32>
    %97 = math.rsqrt %96 : vector<1x1x32xf32>
    %98 = vector.broadcast %97 : vector<1x1x32xf32> to vector<2x8x32xf32>
    %99 = arith.mulf %94, %98 : vector<2x8x32xf32>
    %c0_38 = arith.constant 0 : index
    %c0_39 = arith.constant 0 : index
    %c0_40 = arith.constant 0 : index
    %100 = vector.load %arg6[%c0_38, %c0_39, %c0_40] : memref<2x1x32xf32, #tpu.memory_space<vmem>>, vector<1x1x32xf32>
    %101 = vector.shape_cast %100 : vector<1x1x32xf32> to vector<1x32xf32>
    %102 = vector.shape_cast %101 : vector<1x32xf32> to vector<1x1x32xf32>
    %103 = vector.broadcast %102 : vector<1x1x32xf32> to vector<2x8x32xf32>
    %104 = arith.mulf %103, %99 : vector<2x8x32xf32>
    %c0_41 = arith.constant 0 : index
    %c0_42 = arith.constant 0 : index
    %c0_43 = arith.constant 0 : index
    %105 = vector.load %arg7[%c0_41, %c0_42, %c0_43] : memref<2x1x32xf32, #tpu.memory_space<vmem>>, vector<1x1x32xf32>
    %106 = vector.shape_cast %105 : vector<1x1x32xf32> to vector<1x32xf32>
    %107 = vector.shape_cast %106 : vector<1x32xf32> to vector<1x1x32xf32>
    %108 = vector.broadcast %107 : vector<1x1x32xf32> to vector<2x8x32xf32>
    %109 = arith.addf %104, %108 : vector<2x8x32xf32>
    %cst_44 = arith.constant 0.000000e+00 : f32
    %110 = vector.broadcast %cst_44 : f32 to vector<2x8x32xf32>
    %111 = arith.cmpf oge, %109, %110 : vector<2x8x32xf32>
    %cst_45 = arith.constant 0.00999999977 : f32
    %112 = vector.broadcast %cst_45 : f32 to vector<2x8x32xf32>
    %113 = arith.mulf %112, %109 : vector<2x8x32xf32>
    %114 = arith.select %111, %109, %113 : vector<2x8x32xi1>, vector<2x8x32xf32>
    "tpu.trace_start"() <{level = 10 : i32, message = "tnf,tmf->tnm"}> : () -> ()
    %cst_46 = arith.constant dense<0.000000e+00> : vector<2x8x8xf32>
    %115 = tpu.matmul %114, %114, %cst_46 {dimension_numbers = #tpu.dot_dimension_numbers<[2], [2], [1], [1], [0, 0, 0, 1, 1, 1], [0], [0]>} : vector<2x8x32xf32>, vector<2x8x32xf32>, vector<2x8x8xf32> -> vector<2x8x8xf32>
    "tpu.trace_stop"() : () -> ()
    %116 = arith.mulf %114, %114 : vector<2x8x32xf32>
    %cst_47 = arith.constant dense<0.000000e+00> : vector<2x8xf32>
    %117 = vector.multi_reduction <add>, %116, %cst_47 [2] : vector<2x8x32xf32> to vector<2x8xf32>
    %118 = vector.shape_cast %117 : vector<2x8xf32> to vector<2x8x1xf32>
    %119 = math.sqrt %118 : vector<2x8x1xf32>
    %120 = vector.shape_cast %6 : vector<8x8xf32> to vector<1x8x8xf32>
    %121 = vector.broadcast %120 : vector<1x8x8xf32> to vector<2x8x8xf32>
    %122 = arith.mulf %115, %121 : vector<2x8x8xf32>
    %cst_48 = arith.constant dense<0.000000e+00> : vector<2x8xf32>
    %123 = vector.multi_reduction <add>, %122, %cst_48 [1] : vector<2x8x8xf32> to vector<2x8xf32>
    %124 = vector.shape_cast %123 : vector<2x8xf32> to vector<2x1x8xf32>
    %125 = math.sqrt %124 : vector<2x1x8xf32>
    %126 = vector.broadcast %119 : vector<2x8x1xf32> to vector<2x8x8xf32>
    %127 = vector.broadcast %125 : vector<2x1x8xf32> to vector<2x8x8xf32>
    %128 = arith.mulf %126, %127 : vector<2x8x8xf32>
    %cst_49 = arith.constant 9.99999997E-7 : f32
    %129 = vector.broadcast %cst_49 : f32 to vector<2x8x8xf32>
    %130 = arith.addf %128, %129 : vector<2x8x8xf32>
    %131 = tpu.reciprocal %130 {approx = true} : vector<2x8x8xf32> -> vector<2x8x8xf32>
    %132 = arith.mulf %115, %131 : vector<2x8x8xf32>
    %cst_50 = arith.constant 1.000000e+00 : f32
    %133 = vector.broadcast %cst_50 : f32 to vector<2x8x8xf32>
    %134 = arith.subf %133, %132 : vector<2x8x8xf32>
    %135 = vector.shape_cast %132 : vector<2x8x8xf32> to vector<2x1x8x8xf32>
    %136 = vector.shape_cast %134 : vector<2x8x8xf32> to vector<2x1x8x8xf32>
    %137 = tpu.concatenate %135, %136 in 1 : vector<2x1x8x8xf32>, vector<2x1x8x8xf32> -> vector<2x2x8x8xf32>
    %cst_51 = arith.constant 0.000000e+00 : f32
    %cst_52 = arith.constant 1.000000e+00 : f32
    %138 = vector.broadcast %cst_51 : f32 to vector<2x2x8x8xf32>
    %139 = arith.maximumf %138, %137 : vector<2x2x8x8xf32>
    %140 = vector.broadcast %cst_52 : f32 to vector<2x2x8x8xf32>
    %141 = arith.minimumf %140, %139 : vector<2x2x8x8xf32>
    %c1_53 = arith.constant 1 : index
    %c0_54 = arith.constant 0 : index
    %c0_55 = arith.constant 0 : index
    %c0_56 = arith.constant 0 : index
    %c0_57 = arith.constant 0 : index
    %142 = vector.load %arg8[%c1_53, %c0_54, %c0_55, %c0_56, %c0_57] : memref<3x2x2x8x8xf32, #tpu.memory_space<vmem>>, vector<1x2x2x8x8xf32>
    %143 = vector.shape_cast %142 : vector<1x2x2x8x8xf32> to vector<2x2x8x8xf32>
    %144 = vector.shape_cast %141 : vector<2x2x8x8xf32> to vector<1x2x2x8x8xf32>
    tpu.vector_store %arg8[%c1_53, %c0_54, %c0_55, %c0_56, %c0_57], %144 {strides = array<i32>} : memref<3x2x2x8x8xf32, #tpu.memory_space<vmem>>, vector<1x2x2x8x8xf32>,
    %c1_58 = arith.constant 1 : index
    %c0_59 = arith.constant 0 : index
    %145 = memref.load %arg1[%c1_58, %c0_59] : memref<2x4xf32, #tpu.memory_space<smem>>
    %c1_60 = arith.constant 1 : index
    %c1_61 = arith.constant 1 : index
    %146 = memref.load %arg1[%c1_60, %c1_61] : memref<2x4xf32, #tpu.memory_space<smem>>
    %c1_62 = arith.constant 1 : index
    %c2_63 = arith.constant 2 : index
    %147 = memref.load %arg1[%c1_62, %c2_63] : memref<2x4xf32, #tpu.memory_space<smem>>
    %c1_64 = arith.constant 1 : index
    %c3_65 = arith.constant 3 : index
    %148 = memref.load %arg1[%c1_64, %c3_65] : memref<2x4xf32, #tpu.memory_space<smem>>
    %149 = arith.addf %145, %146 : f32
    %150 = vector.broadcast %149 : f32 to vector<2x8x32xf32>
    %151 = arith.mulf %150, %114 : vector<2x8x32xf32>
    %152 = vector.broadcast %146 : f32 to vector<2x8x32xf32>
    %153 = arith.mulf %152, %114 : vector<2x8x32xf32>
    %154 = vector.shape_cast %151 : vector<2x8x32xf32> to vector<2x8x1x32xf32>
    %155 = vector.shape_cast %153 : vector<2x8x32xf32> to vector<2x1x8x32xf32>
    %156 = vector.broadcast %154 : vector<2x8x1x32xf32> to vector<2x8x8x32xf32>
    %157 = vector.broadcast %155 : vector<2x1x8x32xf32> to vector<2x8x8x32xf32>
    %158 = arith.subf %156, %157 : vector<2x8x8x32xf32>
    %159 = vector.broadcast %147 : f32 to vector<2x8x8x32xf32>
    %160 = arith.mulf %159, %63 : vector<2x8x8x32xf32>
    %161 = vector.broadcast %148 : f32 to vector<2x8x8x32xf32>
    %162 = arith.addf %160, %161 : vector<2x8x8x32xf32>
    %163 = arith.addf %158, %162 : vector<2x8x8x32xf32>
    %164 = math.tanh %163 : vector<2x8x8x32xf32>
    %165 = vector.shape_cast %10 : vector<8x8x1xf32> to vector<1x8x8x1xf32>
    %166 = vector.broadcast %165 : vector<1x8x8x1xf32> to vector<2x8x8x32xf32>
    %167 = arith.mulf %164, %166 : vector<2x8x8x32xf32>
    %cst_66 = arith.constant dense<0.000000e+00> : vector<2x8x32xf32>
    %168 = vector.multi_reduction <add>, %167, %cst_66 [2] : vector<2x8x8x32xf32> to vector<2x8x32xf32>
    %c1_67 = arith.constant 1 : index
    %c0_68 = arith.constant 0 : index
    %169 = memref.load %arg2[%c1_67, %c0_68] : memref<2x2xf32, #tpu.memory_space<smem>>
    %170 = vector.broadcast %169 : f32 to vector<2x8x32xf32>
    %171 = arith.mulf %170, %114 : vector<2x8x32xf32>
    %c1_69 = arith.constant 1 : index
    %c1_70 = arith.constant 1 : index
    %172 = memref.load %arg2[%c1_69, %c1_70] : memref<2x2xf32, #tpu.memory_space<smem>>
    %173 = vector.broadcast %172 : f32 to vector<2x8x32xf32>
    %174 = arith.mulf %173, %168 : vector<2x8x32xf32>
    %175 = arith.addf %171, %174 : vector<2x8x32xf32>
    %cst_71 = arith.constant 0.000000e+00 : f32
    %176 = vector.broadcast %cst_71 : f32 to vector<2x8x32xf32>
    %177 = arith.cmpf oge, %175, %176 : vector<2x8x32xf32>
    %cst_72 = arith.constant 0.00999999977 : f32
    %178 = vector.broadcast %cst_72 : f32 to vector<2x8x32xf32>
    %179 = arith.mulf %178, %175 : vector<2x8x32xf32>
    %180 = arith.select %177, %175, %179 : vector<2x8x32xi1>, vector<2x8x32xf32>
    %181 = vector.shape_cast %180 : vector<2x8x32xf32> to vector<16x32xf32>
    %c1_73 = arith.constant 1 : index
    %c0_74 = arith.constant 0 : index
    %c0_75 = arith.constant 0 : index
    %182 = vector.load %arg5[%c1_73, %c0_74, %c0_75] : memref<2x32x32xf32, #tpu.memory_space<vmem>>, vector<1x32x32xf32>
    %183 = vector.shape_cast %182 : vector<1x32x32xf32> to vector<32x32xf32>
    %cst_76 = arith.constant dense<0.000000e+00> : vector<16x32xf32>
    %184 = tpu.matmul %181, %183, %cst_76 {dimension_numbers = #tpu.dot_dimension_numbers<[1], [0], [0], [1], [0, 0, 1, 1], [], []>} : vector<16x32xf32>, vector<32x32xf32>, vector<16x32xf32> -> vector<16x32xf32>
    %185 = vector.shape_cast %184 : vector<16x32xf32> to vector<2x8x32xf32>
    %cst_77 = arith.constant dense<0.000000e+00> : vector<32xf32>
    %186 = vector.multi_reduction <add>, %185, %cst_77 [0, 1] : vector<2x8x32xf32> to vector<32xf32>
    %187 = vector.shape_cast %186 : vector<32xf32> to vector<1x1x32xf32>
    %cst_78 = arith.constant 1.600000e+01 : f32
    %188 = vector.broadcast %cst_78 : f32 to vector<1x1x32xf32>
    %189 = arith.divf %187, %188 : vector<1x1x32xf32>
    %190 = vector.broadcast %189 : vector<1x1x32xf32> to vector<2x8x32xf32>
    %191 = arith.subf %185, %190 : vector<2x8x32xf32>
    %192 = arith.mulf %191, %191 : vector<2x8x32xf32>
    %cst_79 = arith.constant dense<0.000000e+00> : vector<32xf32>
    %193 = vector.multi_reduction <add>, %192, %cst_79 [0, 1] : vector<2x8x32xf32> to vector<32xf32>
    %194 = vector.shape_cast %193 : vector<32xf32> to vector<1x1x32xf32>
    %cst_80 = arith.constant 1.600000e+01 : f32
    %195 = vector.broadcast %cst_80 : f32 to vector<1x1x32xf32>
    %196 = arith.divf %194, %195 : vector<1x1x32xf32>
    %197 = vector.broadcast %189 : vector<1x1x32xf32> to vector<2x8x32xf32>
    %198 = arith.subf %185, %197 : vector<2x8x32xf32>
    %cst_81 = arith.constant 9.99999974E-6 : f32
    %199 = vector.broadcast %cst_81 : f32 to vector<1x1x32xf32>
    %200 = arith.addf %196, %199 : vector<1x1x32xf32>
    %201 = math.rsqrt %200 : vector<1x1x32xf32>
    %202 = vector.broadcast %201 : vector<1x1x32xf32> to vector<2x8x32xf32>
    %203 = arith.mulf %198, %202 : vector<2x8x32xf32>
    %c1_82 = arith.constant 1 : index
    %c0_83 = arith.constant 0 : index
    %c0_84 = arith.constant 0 : index
    %204 = vector.load %arg6[%c1_82, %c0_83, %c0_84] : memref<2x1x32xf32, #tpu.memory_space<vmem>>, vector<1x1x32xf32>
    %205 = vector.shape_cast %204 : vector<1x1x32xf32> to vector<1x32xf32>
    %206 = vector.shape_cast %205 : vector<1x32xf32> to vector<1x1x32xf32>
    %207 = vector.broadcast %206 : vector<1x1x32xf32> to vector<2x8x32xf32>
    %208 = arith.mulf %207, %203 : vector<2x8x32xf32>
    %c1_85 = arith.constant 1 : index
    %c0_86 = arith.constant 0 : index
    %c0_87 = arith.constant 0 : index
    %209 = vector.load %arg7[%c1_85, %c0_86, %c0_87] : memref<2x1x32xf32, #tpu.memory_space<vmem>>, vector<1x1x32xf32>
    %210 = vector.shape_cast %209 : vector<1x1x32xf32> to vector<1x32xf32>
    %211 = vector.shape_cast %210 : vector<1x32xf32> to vector<1x1x32xf32>
    %212 = vector.broadcast %211 : vector<1x1x32xf32> to vector<2x8x32xf32>
    %213 = arith.addf %208, %212 : vector<2x8x32xf32>
    %cst_88 = arith.constant 0.000000e+00 : f32
    %214 = vector.broadcast %cst_88 : f32 to vector<2x8x32xf32>
    %215 = arith.cmpf oge, %213, %214 : vector<2x8x32xf32>
    %cst_89 = arith.constant 0.00999999977 : f32
    %216 = vector.broadcast %cst_89 : f32 to vector<2x8x32xf32>
    %217 = arith.mulf %216, %213 : vector<2x8x32xf32>
    %218 = arith.select %215, %213, %217 : vector<2x8x32xi1>, vector<2x8x32xf32>
    "tpu.trace_start"() <{level = 10 : i32, message = "tnf,tmf->tnm"}> : () -> ()
    %cst_90 = arith.constant dense<0.000000e+00> : vector<2x8x8xf32>
    %219 = tpu.matmul %218, %218, %cst_90 {dimension_numbers = #tpu.dot_dimension_numbers<[2], [2], [1], [1], [0, 0, 0, 1, 1, 1], [0], [0]>} : vector<2x8x32xf32>, vector<2x8x32xf32>, vector<2x8x8xf32> -> vector<2x8x8xf32>
    "tpu.trace_stop"() : () -> ()
    %220 = arith.mulf %218, %218 : vector<2x8x32xf32>
    %cst_91 = arith.constant dense<0.000000e+00> : vector<2x8xf32>
    %221 = vector.multi_reduction <add>, %220, %cst_91 [2] : vector<2x8x32xf32> to vector<2x8xf32>
    %222 = vector.shape_cast %221 : vector<2x8xf32> to vector<2x8x1xf32>
    %223 = math.sqrt %222 : vector<2x8x1xf32>
    %224 = vector.shape_cast %6 : vector<8x8xf32> to vector<1x8x8xf32>
    %225 = vector.broadcast %224 : vector<1x8x8xf32> to vector<2x8x8xf32>
    %226 = arith.mulf %219, %225 : vector<2x8x8xf32>
    %cst_92 = arith.constant dense<0.000000e+00> : vector<2x8xf32>
    %227 = vector.multi_reduction <add>, %226, %cst_92 [1] : vector<2x8x8xf32> to vector<2x8xf32>
    %228 = vector.shape_cast %227 : vector<2x8xf32> to vector<2x1x8xf32>
    %229 = math.sqrt %228 : vector<2x1x8xf32>
    %230 = vector.broadcast %223 : vector<2x8x1xf32> to vector<2x8x8xf32>
    %231 = vector.broadcast %229 : vector<2x1x8xf32> to vector<2x8x8xf32>
    %232 = arith.mulf %230, %231 : vector<2x8x8xf32>
    %cst_93 = arith.constant 9.99999997E-7 : f32
    %233 = vector.broadcast %cst_93 : f32 to vector<2x8x8xf32>
    %234 = arith.addf %232, %233 : vector<2x8x8xf32>
    %235 = tpu.reciprocal %234 {approx = true} : vector<2x8x8xf32> -> vector<2x8x8xf32>
    %236 = arith.mulf %219, %235 : vector<2x8x8xf32>
    %cst_94 = arith.constant 1.000000e+00 : f32
    %237 = vector.broadcast %cst_94 : f32 to vector<2x8x8xf32>
    %238 = arith.subf %237, %236 : vector<2x8x8xf32>
    %239 = vector.shape_cast %236 : vector<2x8x8xf32> to vector<2x1x8x8xf32>
    %240 = vector.shape_cast %238 : vector<2x8x8xf32> to vector<2x1x8x8xf32>
    %241 = tpu.concatenate %239, %240 in 1 : vector<2x1x8x8xf32>, vector<2x1x8x8xf32> -> vector<2x2x8x8xf32>
    %cst_95 = arith.constant 0.000000e+00 : f32
    %cst_96 = arith.constant 1.000000e+00 : f32
    %242 = vector.broadcast %cst_95 : f32 to vector<2x2x8x8xf32>
    %243 = arith.maximumf %242, %241 : vector<2x2x8x8xf32>
    %244 = vector.broadcast %cst_96 : f32 to vector<2x2x8x8xf32>
    %245 = arith.minimumf %244, %243 : vector<2x2x8x8xf32>
    %c2_97 = arith.constant 2 : index
    %c0_98 = arith.constant 0 : index
    %c0_99 = arith.constant 0 : index
    %c0_100 = arith.constant 0 : index
    %c0_101 = arith.constant 0 : index
    %246 = vector.load %arg8[%c2_97, %c0_98, %c0_99, %c0_100, %c0_101] : memref<3x2x2x8x8xf32, #tpu.memory_space<vmem>>, vector<1x2x2x8x8xf32>
    %247 = vector.shape_cast %246 : vector<1x2x2x8x8xf32> to vector<2x2x8x8xf32>
    %248 = vector.shape_cast %245 : vector<2x2x8x8xf32> to vector<1x2x2x8x8xf32>
    tpu.vector_store %arg8[%c2_97, %c0_98, %c0_99, %c0_100, %c0_101], %248 {strides = array<i32>} : memref<3x2x2x8x8xf32, #tpu.memory_space<vmem>>, vector<1x2x2x8x8xf32>,
    return
  }
  func.func @transform_0(%arg0: i32) -> (i32, i32) {
    %c0_i32 = arith.constant 0 : i32
    %c0_i32_0 = arith.constant 0 : i32
    %c0_i32_1 = arith.constant 0 : i32
    return %c0_i32, %c0_i32_0 : i32, i32
  }
  func.func @transform_1(%arg0: i32) -> (i32, i32) {
    %c0_i32 = arith.constant 0 : i32
    %c0_i32_0 = arith.constant 0 : i32
    %c0_i32_1 = arith.constant 0 : i32
    return %c0_i32, %c0_i32_0 : i32, i32
  }
  func.func @transform_2(%arg0: i32) -> (i32, i32, i32) {
    %c0_i32 = arith.constant 0 : i32
    %c0_i32_0 = arith.constant 0 : i32
    %c0_i32_1 = arith.constant 0 : i32
    %c0_i32_2 = arith.constant 0 : i32
    return %c0_i32, %c0_i32_0, %c0_i32_1 : i32, i32, i32
  }
  func.func @transform_3(%arg0: i32) -> (i32, i32, i32, i32) {
    %c0_i32 = arith.constant 0 : i32
    %c0_i32_0 = arith.constant 0 : i32
    %c0_i32_1 = arith.constant 0 : i32
    %c0_i32_2 = arith.constant 0 : i32
    %c0_i32_3 = arith.constant 0 : i32
    return %c0_i32, %c0_i32_0, %c0_i32_1, %c0_i32_2 : i32, i32, i32, i32
  }
  func.func @transform_4(%arg0: i32) -> (i32, i32, i32) {
    %c0_i32 = arith.constant 0 : i32
    %c0_i32_0 = arith.constant 0 : i32
    %c0_i32_1 = arith.constant 0 : i32
    %c0_i32_2 = arith.constant 0 : i32
    return %c0_i32, %c0_i32_0, %c0_i32_1 : i32, i32, i32
  }
  func.func @transform_5(%arg0: i32) -> (i32, i32, i32) {
    %c0_i32 = arith.constant 0 : i32
    %c0_i32_0 = arith.constant 0 : i32
    %c0_i32_1 = arith.constant 0 : i32
    %c0_i32_2 = arith.constant 0 : i32
    return %c0_i32, %c0_i32_0, %c0_i32_1 : i32, i32, i32
  }
  func.func @transform_6(%arg0: i32) -> (i32, i32, i32) {
    %c0_i32 = arith.constant 0 : i32
    %c0_i32_0 = arith.constant 0 : i32
    %c0_i32_1 = arith.constant 0 : i32
    %c0_i32_2 = arith.constant 0 : i32
    return %c0_i32, %c0_i32_0, %c0_i32_1 : i32, i32, i32
  }
  func.func @transform_7(%arg0: i32) -> (i32, i32, i32, i32, i32) {
    %c0_i32 = arith.constant 0 : i32
    %c0_i32_0 = arith.constant 0 : i32
    %c0_i32_1 = arith.constant 0 : i32
    %c0_i32_2 = arith.constant 0 : i32
    %c0_i32_3 = arith.constant 0 : i32
    %c0_i32_4 = arith.constant 0 : i32
    return %c0_i32, %c0_i32_0, %c0_i32_1, %c0_i32_2, %c0_i32_3 : i32, i32, i32, i32, i32
  }
}

</mosaic_0001>

<bundles_post_ra>
// kernel: graph_network_forward.1
= control target key start
LH: loop header
LB: loop body
LE: loop exit
PB: predicated region body
PF: predicated region fallthrough
CT: control target
= control target key end

     0   :  { %12 = vsyncpa [#allocation3], 0  ;;  %s3030_s0 = inlined_call_operand.vmem [shape: f32[2,4], index: 0, kind: input, shape index: {}]   ;;  %s3031_s1 = inlined_call_operand.vmem [shape: f32[2,2], index: 1, kind: input, shape index: {}]   ;;  %s3032_s2 = inlined_call_operand.vmem [shape: f32[2,8,32], index: 2, kind: input, shape index: {}]   ;;  %s3033_s3 = inlined_call_operand.vmem [shape: f32[2,8,8,32], index: 3, kind: input, shape index: {}]   ;;  %s3034_s4 = inlined_call_operand.vmem [shape: f32[2,32,32], index: 4, kind: input, shape index: {}]   ;;  %s3035_s5 = inlined_call_operand.vmem [shape: f32[2,1,32], index: 5, kind: input, shape index: {}]   ;;  %s3036_s6 = inlined_call_operand.vmem [shape: f32[2,1,32], index: 6, kind: input, shape index: {}]   ;;  %s3037_s7 = inlined_call_operand.vmem [shape: f32[3,2,2,8,8], index: 7, kind: output, shape index: {}]  }
   0x1   :  { %s20_s26 = sshll.u32 %s3030_s0, 4  ;;  %s21_s26 = int_to_ptr.vmem [resolvable:$true] %s20_s26 }
   0x2   :  { %13 = vsyncpa [#allocation5], 0  ;;  %s30_s29 = sshll.u32 %s3031_s1, 4  ;;  %s2248_s30 = scalar_lea.vmem %s21_s26, 32  ;;  %s31_s29 = int_to_ptr.vmem [resolvable:$true] %s30_s29 }
   0x3   :  { %p2249_p0 = scmp.ne.s32.totalorder %s21_s26, %s2248_s30  ;;  %p2253_p1 = scmp.lt.s32.totalorder %s21_s26, %s21_s26 }
   0x4   :  { %p2254_p2 = scmp.lt.s32.totalorder %s2248_s30, %s2248_s30 }
   0x6   :  { %p2255_p3 = por %p2254_p2, %p2253_p1 }
   0x8   :  { %p2256_p4 = pnand %p2255_p3, %p2249_p0 }
   0xa   :  { %2259 = shalt.err (!%p2256_p4)
}
   0xb   :  { %s2276_s8 = smov [#allocation2]   ;;  %s2260_s9 = scalar_lea.vmem %s31_s29, 32 }
   0xc   :  { %23 = dma.vmem_to_smem %s21_s26, 32, %s2276_s8, [#allocation3]  }
   0xd   :  { %p2261_p5 = scmp.ne.s32.totalorder %s31_s29, %s2260_s9  ;;  %p2265_p6 = scmp.lt.s32.totalorder %s31_s29, %s31_s29 }
   0xe   :  { %p2266_p7 = scmp.lt.s32.totalorder %s2260_s9, %s2260_s9 }
  0x10   :  { %p2267_p8 = por %p2266_p7, %p2265_p6 }
  0x12   :  { %p2268_p9 = pnand %p2267_p8, %p2261_p5 }
  0x14   :  { %2271 = shalt.err (!%p2268_p9)
}
  0x15   :  { %s2277_s0 = smov [#allocation4]  }
  0x16   :  { %33 = dma.vmem_to_smem %s31_s29, 32, %s2277_s0, [#allocation5]  }
  0x17   :  { %2272 = dma.done.wait [#allocation3], 32  }
  0x18   :  { %2273 = vsyncadd [#allocation3], 4294967264 }
  0x19   :  { %2274 = dma.done.wait [#allocation5], 32  }
  0x1a   :  { %2275 = vsyncadd [#allocation5], 4294967264 }
  0x1b   :  { %50 = sfence }
  0x1c   :  { %v69_v0 = vlaneseq  ;;  %vm79_vm0 = vcmask 261120   ;;  %v3038_v1 = vmov 0.0   ;;  %v2331_v2 = vld [vmem:[%s3032_s2] sm:$0xff]  ;;  %v2341_v5 = vld [vmem:[%s3032_s2 + $0x8] sm:$0xff]  ;;  %vm2279_vm1 = vmmov 0   ;;  %v830_v23 = vld [vmem:[%s3034_s4 + $0x18] sm:$0xff] }
  0x1d   :  { %2086 = vmatprep.subr.mxu0 %v3038_v1  ;;  %2091 = vmatprep.subr.mxu1 %v3038_v1  ;;  %v829_v24 = vld [vmem:[%s3034_s4 + $0x10] sm:$0xff]  ;;  %v828_v25 = vld [vmem:[%s3034_s4 + $0x8] sm:$0xff]  ;;  %v827_v26 = vld [vmem:[%s3034_s4] sm:$0xff]  ;;  %v226_v27 = vmul.f32 %v2331_v2, %v2331_v2  ;;  %s301_s21 = sld [smem:[#allocation2]]  ;;  %v2280_v29 = vmov 1966171168  }
  0x1e   :  { %v2334_v3 = vshrl.u32 %v69_v0, 7  ;;  %v2336_v4 = vand.u32 127, %v69_v0  ;;  %2087 = vmatpush3.xpose.msk.msra.mxu0 %vm79_vm0, %v2331_v2  ;;  %2088 = vmatprep.mubr.msk.f32.mxu0 %vm2279_vm1, %v3038_v1  ;;  %s2389_s22 = sld [smem:[#allocation2 + $0x1]]  ;;  %v316_v30 = vunpack.c.l.s4 %v2280_v29  ;;  %v55_v46 = vld [vmem:[%s3033_s3 + $0x10] sm:$0xff]  ;;  %v53_v49 = vld [vmem:[%s3033_s3] sm:$0xff]  ;;  %v54_v29 = vld [vmem:[%s3033_s3 + $0x8] sm:$0xff] }
  0x1f   :  { %2092 = vmatpush3.xpose.msk.msra.mxu1 %vm79_vm0, %v2341_v5  ;;  %2093 = vmatprep.mubr.msk.f32.mxu1 %vm2279_vm1, %v3038_v1  ;;  %v228_v28 = vsel %vm79_vm0, %v226_v27, 0.0  ;;  %s2023_s24 = sld [smem:[#allocation2 + $0x2]]  ;;  %v63_v47 = vld [vmem:[%s3033_s3 + $0x50] sm:$0xff]  ;;  %v61_v54 = vld [vmem:[%s3033_s3 + $0x40] sm:$0xff]  ;;  %vm796_vm4 = vcmask 1041409   ;;  %vm798_vm5 = vcmask 1042434  }
  0x20   :  { %vm76_vm2 = vcmp.ne.s32.totalorder %v2334_v3, %v2336_v4  ;;  %v2354_v6 = vsub.s32 0, %v2334_v3  ;;  %v590_v7 = vsub.s32 2, %v2334_v3  ;;  %v597_v8 = vsub.s32 3, %v2334_v3  ;;  %2107 = vmatprep.subr.mxu1 %v3038_v1  ;;  %2096 = vmatprep.subr.mxu0 %v830_v23  ;;  %s2024_s25 = sld [smem:[#allocation2 + $0x3]] }
  0x21   :  { %v2017_v9 = vsel %vm76_vm2, 1.0, %v3038_v1  ;;  %v583_v10 = vsub.s32 1, %v2334_v3  ;;  %2089 = vmatmul.mubr.msk.f32.vlgmr.msra.gmra.mxu0 %vm79_vm0, %v2331_v2  ;;  %v611_v15 = vsub.s32 5, %v2334_v3  ;;  %v604_v16 = vsub.s32 4, %v2334_v3  ;;  %s2651_s0 = sld [smem:[#allocation4]] }
  0x22   :  { %v591_v11 = vrot.slane %v2017_v9, %v590_v7  ;;  %v577_v12 = vrot.slane %v2017_v9, %v2354_v6  ;;  %2094 = vmatmul.mubr.msk.f32.vlgmr.msra.gmra.mxu1 %vm79_vm0, %v2341_v5  ;;  %v598_v13 = vrot.slane %v2017_v9, %v597_v8  ;;  %v625_v19 = vsub.s32 7, %v2334_v3  ;;  %2097 = vmatpush3.msra.mxu0 %v830_v23  ;;  %s2849_s29 = sld [smem:[#allocation4 + $0x80]] }
  0x23   :  { %2109 = vmatprep.mubr.msk.f32.mxu1 %vm2279_vm1, %v3038_v1  ;;  %v584_v14 = vrot.slane %v2017_v9, %v583_v10  ;;  %v612_v17 = vrot.slane %v2017_v9, %v611_v15  ;;  %v605_v18 = vrot.slane %v2017_v9, %v604_v16  ;;  %v618_v20 = vsub.s32 6, %v2334_v3  ;;  %2098 = vmatprep.subr.mxu0 %v829_v24  ;;  %v56_v10 = vld [vmem:[%s3033_s3 + $0x18] sm:$0xff]  ;;  %s2043_s30 = sld [smem:[#allocation4 + $0x81]] }
  0x24   :  { %593 = vbcast.lane.b32.xlu1 %v591_v11, 256  ;;  %579 = vbcast.lane.b32.xlu0 %v577_v12, 256  ;;  %v626_v21 = vrot.slane %v2017_v9, %v625_v19  ;;  %vm73_vm3 = vcmp.eq.s32.totalorder %v2334_v3, %v2336_v4  ;;  %s305_s23 = sadd.f32 %s2389_s22, %s301_s21  ;;  %v317_v31 = vunpack.c.0.s8 %v316_v30  ;;  %v309_v43 = vstv %s2389_s22  ;;  %v62_v30 = vld [vmem:[%s3033_s3 + $0x48] sm:$0xff] }
  0x25   :  { %v619_v22 = vrot.slane %v2017_v9, %v618_v20  ;;  %2099 = vmatpush3.msra.mxu0 %v829_v24  ;;  %v2402_v45 = vstv %s2023_s24  ;;  %v2415_v50 = vmul.f32 %v309_v43, %v2331_v2  ;;  %v2424_v55 = vmul.f32 %v309_v43, %v2341_v5  ;;  %v58_v43 = vld [vmem:[%s3033_s3 + $0x28] sm:$0xff]  ;;  %s2041_s21 = sld [smem:[#allocation2 + $0x83]] }
  0x26   :  { %2100 = vmatprep.subr.mxu0 %v828_v25  ;;  %v306_v32 = vstv %s305_s23  ;;  %v2393_v33 = vsub.s32 %v317_v31, %v2334_v3  ;;  %v511_v53 = vmul.f32 %v2402_v45, %v55_v46  ;;  %v2426_v56 = vstv %s2024_s25  ;;  %s2038_s22 = sld [smem:[#allocation2 + $0x80]] }
  0x27   :  { %2101 = vmatpush3.msra.mxu0 %v828_v25  ;;  %v307_v34 = vmul.f32 %v306_v32, %v2331_v2  ;;  %v308_v35 = vmul.f32 %v306_v32, %v2341_v5  ;;  %v519_v58 = vmul.f32 %v2402_v45, %v63_v47  ;;  %v509_v62 = vmul.f32 %v2402_v45, %v53_v49  ;;  %s2712_s23 = sld [smem:[#allocation2 + $0x81]] }
  0x28   :  { %600 = vbcast.lane.b32.xlu1 %v598_v13, 256  ;;  %586 = vbcast.lane.b32.xlu0 %v584_v14, 256  ;;  %v517_v7 = vmul.f32 %v2402_v45, %v61_v54  ;;  %v528_v9 = vadd.f32 %v2426_v56, %v511_v53  ;;  %v64_v14 = vld [vmem:[%s3033_s3 + $0x58] sm:$0xff]  ;;  %vm800_vm6 = vcmask 1043459   ;;  %vm802_vm7 = vcmask 1044484  }
  0x29   :  { %2102 = vmatprep.subr.mxu0 %v827_v26  ;;  %v321_v36 = vrot.slane %v307_v34, %v2393_v33  ;;  %v370_v37 = vrot.slane %v308_v35, %v2393_v33  ;;  %v314_v59 = vcombine.high %v307_v34, %v307_v34  ;;  %v363_v60 = vcombine.high %v308_v35, %v308_v35 }
  0x2a   :  { %2103 = vmatpush3.msra.mxu0 %v827_v26  ;;  %v536_v13 = vadd.f32 %v2426_v56, %v519_v58  ;;  %v534_v20 = vadd.f32 %v2426_v56, %v517_v7  ;;  %v520_v25 = vmul.f32 %v2402_v45, %v64_v14  ;;  %v514_v58 = vmul.f32 %v2402_v45, %v58_v43  ;;  %v59_v43 = vld [vmem:[%s3033_s3 + $0x30] sm:$0xff] }
  0x2b   :  { %v337_v38 = vrot.slane %v321_v36, %v2393_v33  ;;  %v386_v39 = vrot.slane %v370_v37, %v2393_v33  ;;  %v329_v40 = vcombine.high %v321_v36, %v321_v36  ;;  %v378_v42 = vcombine.high %v370_v37, %v370_v37 }
  0x2c   :  { %614 = vbcast.lane.b32.xlu1 %v612_v17, 256  ;;  %607 = vbcast.lane.b32.xlu0 %v605_v18, 256  ;;  %v328_v15 = vrot.slane %v314_v59, %v2393_v33  ;;  %v377_v16 = vrot.slane %v363_v60, %v2393_v33  ;;  %v526_v18 = vadd.f32 %v2426_v56, %v509_v62  ;;  %v57_v62 = vld [vmem:[%s3033_s3 + $0x20] sm:$0xff]  ;;  %vm804_vm8 = vcmask 1045509  }
  0x2d   :  { %v359_v41 = vcombine.high %v337_v38, %v337_v38  ;;  %v408_v44 = vcombine.high %v386_v39, %v386_v39  ;;  %v351_v48 = vrot.slane %v329_v40, %v2393_v33  ;;  %v400_v51 = vrot.slane %v378_v42, %v2393_v33  ;;  %s1190_s28 = sadd.f32 %s2712_s23, %s2038_s22 }
  0x2e   :  { %v415_v61 = vrot.slane %v337_v38, %v2354_v6  ;;  %v447_v0 = vrot.slane %v386_v39, %v2354_v6  ;;  %v330_v27 = vcombine.high %v328_v15, %v328_v15  ;;  %v379_v31 = vcombine.high %v377_v16, %v377_v16 }
  0x2f   :  { %v423_v52 = vrot.slane %v359_v41, %v2354_v6  ;;  %v455_v57 = vrot.slane %v408_v44, %v2354_v6  ;;  %v361_v63 = vcombine.high %v351_v48, %v351_v48  ;;  %v410_v11 = vcombine.high %v400_v51, %v400_v51 }
  0x30   :  { %628 = vbcast.lane.b32.xlu1 %v626_v21, 256  ;;  %621 = vbcast.lane.b32.xlu0 %v619_v22, 256  ;;  %v492_v17 = vsub.f32 %v415_v61, %v2415_v50  ;;  %v500_v19 = vsub.f32 %v447_v0, %v2424_v55  ;;  %v512_v22 = vmul.f32 %v2402_v45, %v56_v10  ;;  %vm806_vm9 = vcmask 1046534  }
  0x31   :  { %v494_v8 = vsub.f32 %v423_v52, %v2415_v50  ;;  %v502_v12 = vsub.f32 %v455_v57, %v2424_v55  ;;  %v427_v21 = vrot.slane %v361_v63, %v2354_v6  ;;  %v459_v24 = vrot.slane %v410_v11, %v2354_v6  ;;  %v65_v63 = vld [vmem:[%s3033_s3 + $0x60] sm:$0xff] }
  0x32   :  { %v550_v32 = vadd.f32 %v534_v20, %v500_v19  ;;  %v529_v35 = vadd.f32 %v2426_v56, %v512_v22  ;;  %v537_v37 = vadd.f32 %v2426_v56, %v520_v25  ;;  %v419_v38 = vrot.slane %v351_v48, %v2354_v6  ;;  %v66_v48 = vld [vmem:[%s3033_s3 + $0x68] sm:$0xff]  ;;  %v60_v22 = vld [vmem:[%s3033_s3 + $0x38] sm:$0xff] }
  0x33   :  { %v544_v23 = vadd.f32 %v528_v9, %v494_v8  ;;  %v552_v26 = vadd.f32 %v536_v13, %v502_v12  ;;  %v495_v34 = vsub.f32 %v427_v21, %v2415_v50  ;;  %v503_v36 = vsub.f32 %v459_v24, %v2424_v55 }
  0x34   :  { %v451_v39 = vrot.slane %v400_v51, %v2354_v6  ;;  %v510_v40 = vmul.f32 %v2402_v45, %v54_v29  ;;  %v518_v41 = vmul.f32 %v2402_v45, %v62_v30  ;;  %v358_v42 = vrot.slane %v330_v27, %v2393_v33  ;;  %v68_v30 = vld [vmem:[%s3033_s3 + $0x78] sm:$0xff] }
  0x35   :  { %2143 = vtanh.f32 %v544_v23  ;;  %v407_v44 = vrot.slane %v379_v31, %v2393_v33  ;;  %v545_v46 = vadd.f32 %v529_v35, %v495_v34  ;;  %v553_v47 = vadd.f32 %v537_v37, %v503_v36 }
  0x36   :  { %2145 = vtanh.f32 %v552_v26  ;;  %v493_v49 = vsub.f32 %v419_v38, %v2415_v50  ;;  %v501_v51 = vsub.f32 %v451_v39, %v2424_v55  ;;  %v527_v52 = vadd.f32 %v2426_v56, %v510_v40 }
  0x37   :  { %v535_v53 = vadd.f32 %v2426_v56, %v518_v41  ;;  %v2481_v54 = vrot.slane %v328_v15, %v2393_v33  ;;  %v435_v57 = vrot.slane %v358_v42, %v2354_v6  ;;  %v2486_v59 = vrot.slane %v377_v16, %v2393_v33 }
  0x38   :  { %v467_v60 = vrot.slane %v407_v44, %v2354_v6  ;;  %v522_v61 = vmul.f32 %v2402_v45, %v66_v48  ;;  %v543_v0 = vadd.f32 %v527_v52, %v493_v49  ;;  %v531_v9 = vadd.f32 %v2426_v56, %v514_v58 }
  0x39   :  { %v551_v7 = vadd.f32 %v535_v53, %v501_v51  ;;  %v497_v8 = vsub.f32 %v435_v57, %v2415_v50  ;;  %v431_v10 = vrot.slane %v2481_v54, %v2354_v6  ;;  %v513_v11 = vmul.f32 %v2402_v45, %v57_v62  ;;  %v67_v53 = vld [vmem:[%s3033_s3 + $0x70] sm:$0xff]  ;;  %s2598_s3 = sld [smem:[#allocation4 + $0x1]] }
  0x3a   :  { %v505_v12 = vsub.f32 %v467_v60, %v2424_v55  ;;  %v539_v13 = vadd.f32 %v2426_v56, %v522_v61  ;;  %v463_v14 = vrot.slane %v2486_v59, %v2354_v6  ;;  %v521_v15 = vmul.f32 %v2402_v45, %v65_v63 }
  0x3b   :  { %v547_v19 = vadd.f32 %v531_v9, %v497_v8  ;;  %v496_v20 = vsub.f32 %v431_v10, %v2415_v50  ;;  %v530_v21 = vadd.f32 %v2426_v56, %v513_v11  ;;  %v411_v31 = vcombine.high %v407_v44, %v407_v44 }
  0x3c   :  { %v555_v24 = vadd.f32 %v539_v13, %v505_v12  ;;  %v504_v25 = vsub.f32 %v463_v14, %v2424_v55  ;;  %v538_v26 = vadd.f32 %v2426_v56, %v521_v15  ;;  %v516_v36 = vmul.f32 %v2402_v45, %v60_v22 }
  0x3d   :  { %v360_v37 = vcombine.high %v2481_v54, %v2481_v54  ;;  %v546_v39 = vadd.f32 %v530_v21, %v496_v20  ;;  %v523_v9 = vmul.f32 %v2402_v45, %v67_v53  ;;  %vm808_vm10 = vcmask 1047559  }
  0x3e   :  { %v554_v41 = vadd.f32 %v538_v26, %v504_v25  ;;  %v533_v52 = vadd.f32 %v2426_v56, %v516_v36  ;;  %vm250_vm13 = vcmask 64512  }
  0x3f   :  { %v439_v58 = vrot.slane %v360_v37, %v2354_v6 }
  0x41   :  { %v498_v14 = vsub.f32 %v439_v58, %v2415_v50 }
  0x42   :  { %v2144_v16 = vpop.eup %2143 }
  0x4f   :  { %229 = vadd.xlane.f32.xlu0 %v228_v28  ;;  %v542_v28 = vadd.f32 %v526_v18, %v492_v17  ;;  %v362_v17 = vcombine.high %v358_v42, %v358_v42  ;;  %v2146_v18 = vpop.eup %2145  ;;  %v524_v42 = vmul.f32 %v2402_v45, %v68_v30 }
  0x51   :  { %2147 = vtanh.f32 %v542_v28  ;;  %v443_v35 = vrot.slane %v362_v17, %v2354_v6  ;;  %v541_v63 = vadd.f32 %v2426_v56, %v524_v42 }
  0x52   :  { %2149 = vtanh.f32 %v550_v32 }
  0x53   :  { %2151 = vtanh.f32 %v545_v46  ;;  %v475_v46 = vrot.slane %v411_v31, %v2354_v6  ;;  %v499_v51 = vsub.f32 %v443_v35, %v2415_v50 }
  0x54   :  { %2153 = vtanh.f32 %v553_v47  ;;  %v409_v47 = vcombine.high %v2486_v59, %v2486_v59  ;;  %v515_v59 = vmul.f32 %v2402_v45, %v59_v43 }
  0x55   :  { %2155 = vtanh.f32 %v543_v0  ;;  %v549_v11 = vadd.f32 %v533_v52, %v499_v51 }
  0x56   :  { %2157 = vtanh.f32 %v551_v7  ;;  %v507_v7 = vsub.f32 %v475_v46, %v2424_v55  ;;  %v471_v8 = vrot.slane %v409_v47, %v2354_v6  ;;  %v532_v15 = vadd.f32 %v2426_v56, %v515_v59 }
  0x57   :  { %2159 = vtanh.f32 %v547_v19 }
  0x58   :  { %2161 = vtanh.f32 %v555_v24  ;;  %v557_v45 = vadd.f32 %v541_v63, %v507_v7  ;;  %v506_v22 = vsub.f32 %v471_v8, %v2424_v55  ;;  %v548_v26 = vadd.f32 %v532_v15, %v498_v14 }
  0x59   :  { %2163 = vtanh.f32 %v546_v39 }
  0x5a   :  { %2165 = vtanh.f32 %v554_v41 }
  0x5b   :  { %2167 = vtanh.f32 %v549_v11 }
  0x5c   :  { %2169 = vtanh.f32 %v557_v45 }
  0x5d   :  { %2171 = vtanh.f32 %v548_v26 }
  0x5e   :  { %v2148_v23 = vpop.eup %2147 }
  0x5f   :  { %v2150_v27 = vpop.eup %2149 }
  0x60   :  { %v2152_v48 = vpop.eup %2151 }
  0x61   :  { %v2154_v54 = vpop.eup %2153 }
  0x96   :  { %v2513_v28 = vpop.permute.xlu1 %593  ;;  %v2515_v29 = vpop.permute.xlu0 %579 }
  0x97   :  { %v2521_v32 = vmul.f32 %v2144_v16, %v2513_v28  ;;  %v2524_v34 = vmul.f32 %v2146_v18, %v2513_v28  ;;  %v2531_v38 = vmul.f32 %v2148_v23, %v2515_v29  ;;  %v2534_v40 = vmul.f32 %v2150_v27, %v2515_v29  ;;  %v2156_v16 = vpop.eup %2155 }
  0x98   :  { %v2158_v19 = vpop.eup %2157  ;;  %v540_v23 = vadd.f32 %v2426_v56, %v523_v9 }
  0x99   :  { %v660_v44 = vsel %vm79_vm0, %v2521_v32, 0.0  ;;  %v716_v49 = vsel %vm79_vm0, %v2524_v34, 0.0  ;;  %v646_v57 = vsel %vm79_vm0, %v2531_v38, 0.0  ;;  %v702_v61 = vsel %vm79_vm0, %v2534_v40, 0.0  ;;  %v2160_v27 = vpop.eup %2159 }
  0x9a   :  { %v661_v60 = vrot.slane %v660_v44, 4  ;;  %v2558_v62 = vpop.permute.xlu1 %600  ;;  %v717_v0 = vrot.slane %v716_v49, 4  ;;  %v647_v10 = vrot.slane %v646_v57, 4  ;;  %v703_v12 = vrot.slane %v702_v61, 4  ;;  %v2572_v21 = vpop.permute.xlu0 %586 }
  0x9b   :  { %v2565_v13 = vmul.f32 %v2152_v48, %v2558_v62  ;;  %v2570_v18 = vmul.f32 %v2154_v54, %v2558_v62  ;;  %v2581_v35 = vmul.f32 %v2156_v16, %v2572_v21  ;;  %v2584_v36 = vmul.f32 %v2158_v19, %v2572_v21  ;;  %v2162_v55 = vpop.eup %2161 }
  0x9c   :  { %v662_v17 = vadd.f32 %v661_v60, %v660_v44  ;;  %v718_v20 = vadd.f32 %v717_v0, %v716_v49  ;;  %v648_v24 = vadd.f32 %v647_v10, %v646_v57  ;;  %v704_v25 = vadd.f32 %v703_v12, %v702_v61  ;;  %v2164_v51 = vpop.eup %2163 }
  0x9d   :  { %v667_v50 = vsel %vm79_vm0, %v2565_v13, 0.0  ;;  %v723_v31 = vsel %vm79_vm0, %v2570_v18, 0.0  ;;  %v556_v39 = vadd.f32 %v540_v23, %v506_v22  ;;  %v653_v43 = vsel %vm79_vm0, %v2581_v35, 0.0  ;;  %v2166_v57 = vpop.eup %2165 }
  0x9e   :  { %v663_v30 = vrot.slane %v662_v17, 2  ;;  %v719_v56 = vrot.slane %v718_v20, 2  ;;  %v2586_v37 = vpop.permute.xlu1 %614  ;;  %v649_v41 = vrot.slane %v648_v24, 2  ;;  %v668_v42 = vrot.slane %v667_v50, 4  ;;  %v2604_v8 = vpop.permute.xlu0 %607 }
  0x9f   :  { %3046 = vst [vmem:[#allocation8_spill] sm:$0xff] %v2586_v37  ;;  %v709_v44 = vsel %vm79_vm0, %v2584_v36, 0.0  ;;  %v705_v46 = vrot.slane %v704_v25, 2  ;;  %v724_v47 = vrot.slane %v723_v31, 4  ;;  %v654_v48 = vrot.slane %v653_v43, 4 }
  0xa0   :  { %v710_v49 = vrot.slane %v709_v44, 4  ;;  %v664_v52 = vadd.f32 %v663_v30, %v662_v17  ;;  %v2593_v53 = vmul.f32 %v2160_v27, %v2586_v37  ;;  %v2596_v54 = vmul.f32 %v2162_v55, %v2586_v37  ;;  %v2168_v30 = vpop.eup %2167 }
  0xa1   :  { %v720_v58 = vadd.f32 %v719_v56, %v718_v20  ;;  %v655_v59 = vadd.f32 %v654_v48, %v653_v43  ;;  %2173 = vtanh.f32 %v556_v39  ;;  %v650_v61 = vadd.f32 %v649_v41, %v648_v24 }
  0xa2   :  { %v711_v60 = vadd.f32 %v710_v49, %v709_v44  ;;  %v669_v63 = vadd.f32 %v668_v42, %v667_v50  ;;  %v681_v0 = vsel %vm79_vm0, %v2593_v53, 0.0  ;;  %v737_v7 = vsel %vm79_vm0, %v2596_v54, 0.0 }
  0xa3   :  { %v706_v9 = vadd.f32 %v705_v46, %v704_v25  ;;  %v725_v10 = vadd.f32 %v724_v47, %v723_v31  ;;  %v656_v11 = vrot.slane %v655_v59, 2  ;;  %v665_v14 = vrot.slane %v664_v52, 1  ;;  %v2170_v46 = vpop.eup %2169 }
  0xa4   :  { %v712_v12 = vrot.slane %v711_v60, 2  ;;  %v682_v15 = vrot.slane %v681_v0, 4  ;;  %v738_v16 = vrot.slane %v737_v7, 4  ;;  %v2607_v20 = vmul.f32 %v2164_v51, %v2604_v8 }
  0xa5   :  { %v657_v17 = vadd.f32 %v656_v11, %v655_v59  ;;  %v2610_v45 = vmul.f32 %v2166_v57, %v2604_v8  ;;  %v721_v22 = vrot.slane %v720_v58, 1  ;;  %v651_v23 = vrot.slane %v650_v61, 1  ;;  %v2619_v57 = vpop.permute.xlu1 %628 }
  0xa6   :  { %v713_v19 = vadd.f32 %v712_v12, %v711_v60  ;;  %v670_v24 = vrot.slane %v669_v63, 2  ;;  %v707_v50 = vrot.slane %v706_v9, 1  ;;  %v726_v25 = vrot.slane %v725_v10, 2  ;;  %3047 = vst [vmem:[#allocation9_spill] sm:$0xff] %v2619_v57 }
  0xa7   :  { %v674_v26 = vsel %vm79_vm0, %v2607_v20, 0.0  ;;  %v730_v27 = vsel %vm79_vm0, %v2610_v45, 0.0  ;;  %v683_v31 = vadd.f32 %v682_v15, %v681_v0  ;;  %v739_v55 = vadd.f32 %v738_v16, %v737_v7  ;;  %v2172_v16 = vpop.eup %2171 }
  0xa8   :  { %v675_v56 = vrot.slane %v674_v26, 4  ;;  %v731_v39 = vrot.slane %v730_v27, 4  ;;  %v2617_v41 = vstv %s2598_s3  ;;  %v666_v42 = vadd.f32 %v665_v14, %v664_v52 }
  0xa9   :  { %v658_v43 = vrot.slane %v657_v17, 1  ;;  %v714_v44 = vrot.slane %v713_v19, 1  ;;  %v722_v47 = vadd.f32 %v721_v22, %v720_v58  ;;  %v671_v48 = vadd.f32 %v670_v24, %v669_v63 }
  0xaa   :  { %v676_v49 = vadd.f32 %v675_v56, %v674_v26  ;;  %v732_v51 = vadd.f32 %v731_v39, %v730_v27  ;;  %v652_v59 = vadd.f32 %v651_v23, %v650_v61  ;;  %v708_v60 = vadd.f32 %v707_v50, %v706_v9 }
  0xab   :  { %v727_v11 = vadd.f32 %v726_v25, %v725_v10  ;;  %v684_v0 = vrot.slane %v683_v31, 2  ;;  %v740_v7 = vrot.slane %v739_v55, 2  ;;  %v659_v52 = vadd.f32 %v658_v43, %v657_v17 }
  0xac   :  { %v677_v12 = vrot.slane %v676_v49, 2  ;;  %v733_v15 = vrot.slane %v732_v51, 2  ;;  %v715_v14 = vadd.f32 %v714_v44, %v713_v19  ;;  %v2622_v1 = vmul.f32 %v2168_v30, %v2619_v57  ;;  %v2633_v19 = vpop.permute.xlu0 %621 }
  0xad   :  { %v2625_v58 = vmul.f32 %v2170_v46, %v2619_v57  ;;  %v766_v61 = vmul.f32 %v2617_v41, %v666_v42  ;;  %v774_v9 = vmul.f32 %v2617_v41, %v722_v47  ;;  %v672_v10 = vrot.slane %v671_v48, 1  ;;  %3048 = vst [vmem:[#allocation10_spill] sm:$0xff] %v2633_v19 }
  0xae   :  { %v2174_v63 = vpop.eup %2173  ;;  %v678_v22 = vadd.f32 %v677_v12, %v676_v49  ;;  %v728_v23 = vrot.slane %v727_v11, 1  ;;  %v734_v24 = vadd.f32 %v733_v15, %v732_v51  ;;  %v695_v50 = vsel %vm79_vm0, %v2622_v1, 0.0 }
  0xaf   :  { %v751_v17 = vsel %vm79_vm0, %v2625_v58, 0.0  ;;  %v764_v25 = vmul.f32 %v2617_v41, %v652_v59  ;;  %v772_v26 = vmul.f32 %v2617_v41, %v708_v60  ;;  %v685_v27 = vadd.f32 %v684_v0, %v683_v31 }
  0xb0   :  { %v696_v30 = vrot.slane %v695_v50, 4  ;;  %v765_v56 = vmul.f32 %v2617_v41, %v659_v52  ;;  %v773_v39 = vmul.f32 %v2617_v41, %v715_v14  ;;  %v741_v42 = vadd.f32 %v740_v7, %v739_v55 }
  0xb1   :  { %v752_v43 = vrot.slane %v751_v17, 4  ;;  %v679_v44 = vrot.slane %v678_v22, 1  ;;  %v2640_v47 = vmul.f32 %v2172_v16, %v2633_v19  ;;  %v2643_v49 = vmul.f32 %v2174_v63, %v2633_v19 }
  0xb2   :  { %v697_v46 = vadd.f32 %v696_v30, %v695_v50  ;;  %v673_v51 = vadd.f32 %v672_v10, %v671_v48  ;;  %v729_v59 = vadd.f32 %v728_v23, %v727_v11  ;;  %v735_v12 = vrot.slane %v734_v24, 1 }
  0xb3   :  { %v753_v60 = vadd.f32 %v752_v43, %v751_v17  ;;  %v686_v31 = vrot.slane %v685_v27, 1  ;;  %v688_v15 = vsel %vm79_vm0, %v2640_v47, 0.0  ;;  %v744_v55 = vsel %vm79_vm0, %v2643_v49, 0.0 }
  0xb4   :  { %v698_v0 = vrot.slane %v697_v46, 2  ;;  %v810_v7 = vsel %vm796_vm4, %v773_v39, %v772_v26  ;;  %v689_v16 = vrot.slane %v688_v15, 4  ;;  %v745_v14 = vrot.slane %v744_v55, 4 }
  0xb5   :  { %v754_v52 = vrot.slane %v753_v60, 2  ;;  %v797_v63 = vsel %vm796_vm4, %v765_v56, %v764_v25  ;;  %v742_v50 = vrot.slane %v741_v42, 1  ;;  %v680_v48 = vadd.f32 %v679_v44, %v678_v22 }
  0xb6   :  { %v699_v11 = vadd.f32 %v698_v0, %v697_v46  ;;  %v736_v10 = vadd.f32 %v735_v12, %v734_v24  ;;  %v690_v17 = vadd.f32 %v689_v16, %v688_v15  ;;  %v746_v30 = vadd.f32 %v745_v14, %v744_v55 }
  0xb7   :  { %v755_v23 = vadd.f32 %v754_v52, %v753_v60  ;;  %v811_v43 = vsel %vm798_vm5, %v774_v9, %v810_v7  ;;  %v799_v37 = vsel %vm798_vm5, %v766_v61, %v797_v63  ;;  %v767_v25 = vmul.f32 %v2617_v41, %v673_v51 }
  0xb8   :  { %v700_v57 = vrot.slane %v699_v11, 1  ;;  %v691_v39 = vrot.slane %v690_v17, 2  ;;  %v747_v19 = vrot.slane %v746_v30, 2  ;;  %v775_v22 = vmul.f32 %v2617_v41, %v729_v59 }
  0xb9   :  { %v756_v26 = vrot.slane %v755_v23, 1  ;;  %v687_v56 = vadd.f32 %v686_v31, %v685_v27  ;;  %v743_v24 = vadd.f32 %v742_v50, %v741_v42  ;;  %v768_v44 = vmul.f32 %v2617_v41, %v680_v48 }
  0xba   :  { %v776_v46 = vmul.f32 %v2617_v41, %v736_v10  ;;  %v692_v9 = vadd.f32 %v691_v39, %v690_v17  ;;  %v748_v12 = vadd.f32 %v747_v19, %v746_v30  ;;  %v701_v60 = vadd.f32 %v700_v57, %v699_v11 }
  0xbb   :  { %v757_v0 = vadd.f32 %v756_v26, %v755_v23  ;;  %v801_v15 = vsel %vm800_vm6, %v767_v25, %v799_v37  ;;  %v812_v55 = vsel %vm800_vm6, %v775_v22, %v811_v43  ;;  %v769_v51 = vmul.f32 %v2617_v41, %v687_v56 }
  0xbc   :  { %v693_v61 = vrot.slane %v692_v9, 1  ;;  %v749_v7 = vrot.slane %v748_v12, 1  ;;  %v777_v59 = vmul.f32 %v2617_v41, %v743_v24  ;;  %v759_v27 = vstv %s2651_s0 }
  0xbd   :  { %v803_v52 = vsel %vm802_vm7, %v768_v44, %v801_v15  ;;  %v813_v19 = vsel %vm802_vm7, %v776_v46, %v812_v55  ;;  %v779_v57 = vmul.f32 %v2617_v41, %v757_v0  ;;  %v771_v37 = vmul.f32 %v2617_v41, %v701_v60 }
  0xbe   :  { %v694_v42 = vadd.f32 %v693_v61, %v692_v9  ;;  %v750_v31 = vadd.f32 %v749_v7, %v748_v12  ;;  %v760_v63 = vmul.f32 %v759_v27, %v2331_v2  ;;  %v761_v50 = vmul.f32 %v759_v27, %v2341_v5 }
  0xbf   :  { %v805_v48 = vsel %vm804_vm8, %v769_v51, %v803_v52  ;;  %v814_v11 = vsel %vm804_vm8, %v777_v59, %v813_v19  ;;  %v3049_v25 = vmov 0.0  }
  0xc0   :  { %v770_v16 = vmul.f32 %v2617_v41, %v694_v42  ;;  %v778_v14 = vmul.f32 %v2617_v41, %v750_v31  ;;  %v2684_v22 = vsel %vm73_vm3, 1.0, %v3049_v25 }
  0xc2   :  { %v807_v10 = vsel %vm806_vm9, %v770_v16, %v805_v48  ;;  %v815_v23 = vsel %vm806_vm9, %v778_v14, %v814_v11 }
  0xc3   :  { %v809_v17 = vsel %vm808_vm10, %v771_v37, %v807_v10  ;;  %v816_v30 = vsel %vm808_vm10, %v779_v57, %v815_v23  ;;  %v2047_v23 = vld [vmem:[%s3034_s4 + $0x38] sm:$0xff] }
  0xc4   :  { %v819_v43 = vadd.f32 %v809_v17, %v760_v63  ;;  %v820_v26 = vadd.f32 %v816_v30, %v761_v50  ;;  %v2046_v17 = vld [vmem:[%s3034_s4 + $0x30] sm:$0xff]  ;;  %2117 = vmatprep.subr.mxu0 %v2047_v23  ;;  %v2045_v30 = vld [vmem:[%s3034_s4 + $0x28] sm:$0xff] }
  0xc6   :  { %vm821_vm11 = vcmp.ge.f32.partialorder %v819_v43, 0.0  ;;  %v823_v41 = vmul.f32 0.01, %v819_v43  ;;  %vm822_vm12 = vcmp.ge.f32.partialorder %v820_v26, 0.0  ;;  %v824_v2 = vmul.f32 0.01, %v820_v26 }
  0xc8   :  { %v825_v39 = vsel %vm821_vm11, %v819_v43, %v823_v41  ;;  %v826_v5 = vsel %vm822_vm12, %v820_v26, %v824_v2  ;;  %v2044_v43 = vld [vmem:[%s3034_s4 + $0x20] sm:$0xff]  ;;  %s2040_s4 = sld [smem:[#allocation2 + $0x82]] }
  0xc9   :  { %2104 = vmatprep.mubr.msk.f32.mxu0 %vm79_vm0, %v825_v39 }
  0xca   :  { %2105 = vmatmul.mubr.msk.f32.vlgmr.msra.gmra.mxu0 %vm79_vm0, %v826_v5 }
  0xcb   :  { %2118 = vmatpush3.msra.mxu0 %v2047_v23 }
  0xcc   :  { %2119 = vmatprep.subr.mxu0 %v2046_v17 }
  0xcd   :  { %2120 = vmatpush3.msra.mxu0 %v2046_v17  ;;  %v2029_v17 = vld [vmem:[%s3036_s6] ss:$0 sm:$0xff] }
  0xce   :  { %2121 = vmatprep.subr.mxu0 %v2045_v30 }
  0xcf   :  { %2122 = vmatpush3.msra.mxu0 %v2045_v30 }
  0xd0   :  { %2123 = vmatprep.subr.mxu0 %v2044_v43 }
  0xd1   :  { %2124 = vmatpush3.msra.mxu0 %v2044_v43 }
  0xd8   :  { %v230_v12 = vpop.xlane.xlu0 %229 }
  0xd9   :  { %2175 = vrsqrt.f32 %v230_v12  ;;  %vm236_vm14 = vcmp.eq.f32.partialorder %v230_v12, inf  ;;  %v239_v4 = vand.u32 2147483648, %v230_v12  ;;  %vm238_vm15 = vcmp.eq.f32.partialorder %v230_v12, 0.0 }
  0xe1   :  { %v149_v56 = vpop.f32.mrf.mxu0 }
  0xe2   :  { %v248_v24 = vmul.f32 %v2684_v22, %v149_v56 }
  0xe3   :  { %v2090_v44 = vpop.f32.mrf.mxu0 }
  0xe4   :  { %v251_v46 = vsel %vm250_vm13, %v248_v24, 0.0 }
  0xe5   :  { %v252_v9 = vrot.slane %v251_v46, 4 }
  0xe6   :  { %v2176_v7 = vpop.eup %2175 }
  0xe7   :  { %v253_v60 = vadd.f32 %v252_v9, %v251_v46  ;;  %v235_v3 = vmul.f32 %v2176_v7, %v230_v12 }
  0xe9   :  { %v254_v0 = vrot.slane %v253_v60, 2  ;;  %v237_v51 = vsel %vm236_vm14, %v230_v12, %v235_v3 }
  0xea   :  { %v240_v31 = vsel %vm238_vm15, %v239_v4, %v237_v51 }
  0xeb   :  { %v255_v15 = vadd.f32 %v254_v0, %v253_v60 }
  0xed   :  { %v256_v55 = vrot.slane %v255_v15, 1 }
  0xef   :  { %v257_v61 = vadd.f32 %v256_v55, %v255_v15 }
  0xf1   :  { %2177 = vrsqrt.f32 %v257_v61  ;;  %vm267_vm2 = vcmp.eq.f32.partialorder %v257_v61, inf  ;;  %v270_v27 = vand.u32 2147483648, %v257_v61  ;;  %vm269_vm3 = vcmp.eq.f32.partialorder %v257_v61, 0.0 }
  0xfe   :  { %v2178_v59 = vpop.eup %2177 }
  0xff   :  { %v266_v42 = vmul.f32 %v2178_v59, %v257_v61 }
 0x101   :  { %v268_v52 = vsel %vm267_vm2, %v257_v61, %v266_v42 }
 0x102   :  { %v271_v19 = vsel %vm269_vm3, %v270_v27, %v268_v52 }
 0x103   :  { %v279_v57 = vmul.f32 %v271_v19, %v240_v31 }
 0x105   :  { %v281_v37 = vadd.f32 1e-06, %v279_v57 }
 0x107   :  { %2179 = vrcp.f32 %v281_v37  ;;  %v2714_v37 = vstv %s2040_s4 }
 0x114   :  { %v2180_v16 = vpop.eup %2179 }
 0x115   :  { %v285_v14 = vmul.f32 %v2180_v16, %v149_v56  ;;  %v1396_v16 = vmul.f32 %v2714_v37, %v2521_v32 }
 0x117   :  { %v287_v63 = vsub.f32 1.0, %v285_v14  ;;  %v289_v50 = vmax.f32 %v285_v14, 0.0 }
 0x119   :  { %v290_v48 = vmax.f32 %v287_v63, 0.0  ;;  %v293_v11 = vmin.f32 %v289_v50, 1.0  ;;  %v2718_v63 = vstv %s2041_s21  ;;  %v1404_v50 = vmul.f32 %v2714_v37, %v2524_v34 }
 0x11a   :  { %v2732_v32 = vadd.f32 %v2718_v63, %v1396_v16 }
 0x11b   :  { %v294_v10 = vmin.f32 %v290_v48, 1.0  ;;  %297 = vst.msk [vmem:[%s3037_s7] sm:$0xff] %vm250_vm13, %v293_v11  ;;  %v2028_v48 = vld [vmem:[%s3035_s5] ss:$0 sm:$0xff]  ;;  %v1394_v11 = vmul.f32 %v2714_v37, %v2531_v38  ;;  %v2735_v34 = vadd.f32 %v2718_v63, %v1404_v50  ;;  %v1397_v38 = vmul.f32 %v2714_v37, %v2565_v13 }
 0x11c   :  { %v1401_v13 = vmul.f32 %v2714_v37, %v2622_v1 }
 0x11d   :  { %298 = vst.msk [vmem:[%s3037_s7 + $0x8] sm:$0xff] %vm250_vm13, %v294_v10 }
 0x18a   :  { %v2106_v26 = vpop.f32.mrf.mxu0 }
 0x18b   :  { %v913_v2 = vsel %vm79_vm0, %v2106_v26, 0.0 }
 0x18c   :  { %v903_v41 = vpop.f32.mrf.mxu0 }
 0x18d   :  { %v912_v39 = vsel %vm79_vm0, %v903_v41, 0.0 }
 0x18e   :  { %v914_v5 = vadd.f32 %v913_v2, %v912_v39  ;;  %v2744_v2 = vadd.f32 %v2718_v63, %v1394_v11  ;;  %v1403_v39 = vmul.f32 %v2714_v37, %v2584_v36  ;;  %v2759_v36 = vmul.f32 %v2714_v37, %v2570_v18 }
 0x190   :  { %v915_v56 = vrot.slane %v914_v5, 4  ;;  %v2768_v1 = vadd.f32 %v2718_v63, %v1403_v39 }
 0x192   :  { %v916_v24 = vadd.f32 %v915_v56, %v914_v5 }
 0x194   :  { %v917_v44 = vrot.slane %v916_v24, 2 }
 0x196   :  { %v918_v46 = vadd.f32 %v917_v44, %v916_v24  ;;  %v1399_v24 = vmul.f32 %v2714_v37, %v2593_v53  ;;  %v1191_v44 = vstv %s1190_s28  ;;  %v2762_v53 = vadd.f32 %v2718_v63, %v1397_v38 }
 0x198   :  { %v919_v9 = vrot.slane %v918_v46, 1 }
 0x19a   :  { %v920_v12 = vadd.f32 %v919_v9, %v918_v46 }
 0x19c   :  { %v922_v60 = vmul.f32 0.0625, %v920_v12  ;;  %v1400_v12 = vmul.f32 %v2714_v37, %v2640_v47  ;;  %v2786_v47 = vadd.f32 %v2718_v63, %v1401_v13 }
 0x19e   :  { %v923_v0 = vsub.f32 %v903_v41, %v922_v60  ;;  %v924_v15 = vsub.f32 %v2106_v26, %v922_v60  ;;  %v1402_v26 = vmul.f32 %v2714_v37, %v2534_v40  ;;  %v1395_v41 = vmul.f32 %v2714_v37, %v2581_v35 }
 0x19f   :  { %v1398_v40 = vmul.f32 %v2714_v37, %v2607_v20 }
 0x1a0   :  { %v925_v55 = vmul.f32 %v923_v0, %v923_v0  ;;  %v926_v61 = vmul.f32 %v924_v15, %v924_v15  ;;  %v2755_v9 = vadd.f32 %v2718_v63, %v1402_v26  ;;  %v2765_v20 = vadd.f32 %v2718_v63, %v1395_v41 }
 0x1a2   :  { %v927_v7 = vsel %vm79_vm0, %v925_v55, 0.0  ;;  %v928_v3 = vsel %vm79_vm0, %v926_v61, 0.0 }
 0x1a3   :  { %v929_v4 = vadd.f32 %v928_v3, %v927_v7  ;;  %v1416_v7 = vadd.f32 %v2718_v63, %v1399_v24  ;;  %v1415_v3 = vadd.f32 %v2718_v63, %v1398_v40 }
 0x1a5   :  { %v930_v51 = vrot.slane %v929_v4, 4 }
 0x1a7   :  { %v931_v59 = vadd.f32 %v930_v51, %v929_v4 }
 0x1a9   :  { %v932_v27 = vrot.slane %v931_v59, 2 }
 0x1ab   :  { %v933_v42 = vadd.f32 %v932_v27, %v931_v59 }
 0x1ad   :  { %v934_v31 = vrot.slane %v933_v42, 1 }
 0x1af   :  { %v935_v52 = vadd.f32 %v934_v31, %v933_v42  ;;  %v1417_v31 = vadd.f32 %v2718_v63, %v1400_v12 }
 0x1b1   :  { %v936_v19 = vmul.f32 0.0625, %v935_v52 }
 0x1b3   :  { %v937_v57 = vadd.f32 1e-05, %v936_v19 }
 0x1b5   :  { %2181 = vrsqrt.f32 %v937_v57 }
 0x1c2   :  { %v2182_v14 = vpop.eup %2181 }
 0x1c3   :  { %v939_v10 = vmul.f32 %v2182_v14, %v923_v0  ;;  %v940_v23 = vmul.f32 %v2182_v14, %v924_v15  ;;  %v1194_v15 = vstv %s2712_s23 }
 0x1c5   :  { %v948_v30 = vmul.f32 %v2028_v48, %v939_v10  ;;  %v949_v43 = vmul.f32 %v2028_v48, %v940_v23 }
 0x1c7   :  { %v957_v5 = vadd.f32 %v2029_v17, %v948_v30  ;;  %v958_v56 = vadd.f32 %v2029_v17, %v949_v43 }
 0x1c9   :  { %v961_v35 = vmul.f32 0.01, %v957_v5  ;;  %vm959_vm11 = vcmp.ge.f32.partialorder %v957_v5, 0.0  ;;  %vm960_vm12 = vcmp.ge.f32.partialorder %v958_v56, 0.0  ;;  %v962_v46 = vmul.f32 0.01, %v958_v56 }
 0x1cb   :  { %v2772_v60 = vsel %vm959_vm11, %v957_v5, %v961_v35  ;;  %v2774_v0 = vsel %vm960_vm12, %v958_v56, %v962_v46 }
 0x1cc   :  { %2108 = vmatpush3.xpose.msk.msra.mxu1 %vm79_vm0, %v2772_v60  ;;  %v1192_v18 = vmul.f32 %v1191_v44, %v2772_v60  ;;  %v1111_v55 = vmul.f32 %v2772_v60, %v2772_v60  ;;  %v1193_v61 = vmul.f32 %v1191_v44, %v2774_v0  ;;  %v1112_v4 = vmul.f32 %v2774_v0, %v2774_v0 }
 0x1cd   :  { %2112 = vmatprep.subr.mxu1 %v3049_v25  ;;  %v1195_v52 = vmul.f32 %v1194_v15, %v2772_v60  ;;  %v2804_v48 = vmul.f32 %v1194_v15, %v2774_v0 }
 0x1ce   :  { %v1199_v51 = vcombine.high %v1192_v18, %v1192_v18  ;;  %v1206_v59 = vrot.slane %v1192_v18, %v2393_v33  ;;  %v1113_v27 = vsel %vm79_vm0, %v1111_v55, 0.0  ;;  %v1248_v42 = vcombine.high %v1193_v61, %v1193_v61 }
 0x1cf   :  { %1114 = vadd.xlane.f32.xlu0 %v1113_v27  ;;  %2110 = vmatmul.mubr.msk.f32.vlgmr.msra.gmra.mxu1 %vm79_vm0, %v2772_v60  ;;  %v1255_v19 = vrot.slane %v1193_v61, %v2393_v33  ;;  %v1116_v23 = vsel %vm79_vm0, %v1112_v4, 0.0 }
 0x1d0   :  { %v1213_v57 = vrot.slane %v1199_v51, %v2393_v33  ;;  %v1214_v16 = vcombine.high %v1206_v59, %v1206_v59  ;;  %v1222_v14 = vrot.slane %v1206_v59, %v2393_v33  ;;  %2113 = vmatpush3.xpose.msk.msra.mxu1 %vm79_vm0, %v2774_v0  ;;  %v1262_v50 = vrot.slane %v1248_v42, %v2393_v33 }
 0x1d1   :  { %v1263_v11 = vcombine.high %v1255_v19, %v1255_v19  ;;  %v1271_v10 = vrot.slane %v1255_v19, %v2393_v33  ;;  %2114 = vmatprep.mubr.msk.f32.mxu1 %vm2279_vm1, %v3049_v25  ;;  %2128 = vmatprep.subr.mxu1 %v3049_v25 }
 0x1d2   :  { %v1215_v17 = vcombine.high %v1213_v57, %v1213_v57  ;;  %v1229_v30 = vrot.slane %v1213_v57, %v2393_v33  ;;  %v1236_v43 = vrot.slane %v1214_v16, %v2393_v33  ;;  %v1244_v26 = vcombine.high %v1222_v14, %v1222_v14 }
 0x1d3   :  { %v1300_v38 = vrot.slane %v1222_v14, %v2354_v6  ;;  %v1264_v41 = vcombine.high %v1262_v50, %v1262_v50  ;;  %v1278_v39 = vrot.slane %v1262_v50, %v2393_v33  ;;  %v1285_v5 = vrot.slane %v1263_v11, %v2393_v33  ;;  %1117 = vadd.xlane.f32.xlu0 %v1116_v23 }
 0x1d4   :  { %v1243_v56 = vrot.slane %v1215_v17, %v2393_v33  ;;  %v1245_v24 = vcombine.high %v1229_v30, %v1229_v30  ;;  %v1246_v40 = vcombine.high %v1236_v43, %v1236_v43  ;;  %v1304_v13 = vrot.slane %v1236_v43, %v2354_v6  ;;  %2115 = vmatmul.mubr.msk.f32.vlgmr.msra.gmra.mxu1 %vm79_vm0, %v2774_v0 }
 0x1d5   :  { %v1308_v44 = vrot.slane %v1244_v26, %v2354_v6  ;;  %v1316_v35 = vrot.slane %v1229_v30, %v2354_v6  ;;  %v1377_v46 = vsub.f32 %v1300_v38, %v1195_v52  ;;  %v1292_v12 = vrot.slane %v1264_v41, %v2393_v33  ;;  %2130 = vmatprep.mubr.msk.f32.mxu1 %vm2279_vm1, %v3049_v25 }
 0x1d6   :  { %v1247_v18 = vcombine.high %v1243_v56, %v1243_v56  ;;  %v1312_v15 = vrot.slane %v1246_v40, %v2354_v6  ;;  %v1320_v55 = vrot.slane %v1243_v56, %v2354_v6  ;;  %v1324_v61 = vrot.slane %v1245_v24, %v2354_v6 }
 0x1d7   :  { %v1378_v4 = vsub.f32 %v1304_v13, %v1195_v52  ;;  %v1379_v51 = vsub.f32 %v1308_v44, %v1195_v52  ;;  %v1381_v59 = vsub.f32 %v1316_v35, %v1195_v52  ;;  %v1427_v27 = vadd.f32 %v2744_v2, %v1377_v46 }
 0x1d8   :  { %v1328_v42 = vrot.slane %v1247_v18, %v2354_v6  ;;  %v1380_v19 = vsub.f32 %v1312_v15, %v1195_v52  ;;  %v1382_v57 = vsub.f32 %v1320_v55, %v1195_v52  ;;  %v1383_v33 = vsub.f32 %v1324_v61, %v1195_v52 }
 0x1d9   :  { %v1428_v16 = vadd.f32 %v2765_v20, %v1378_v4  ;;  %v1429_v14 = vadd.f32 %v2732_v32, %v1379_v51  ;;  %v1431_v50 = vadd.f32 %v1415_v3, %v1381_v59  ;;  %2183 = vtanh.f32 %v1427_v27 }
 0x1da   :  { %v1384_v11 = vsub.f32 %v1328_v42, %v1195_v52  ;;  %v1430_v23 = vadd.f32 %v2762_v53, %v1380_v19  ;;  %v1432_v17 = vadd.f32 %v1416_v7, %v1382_v57  ;;  %v1433_v30 = vadd.f32 %v1417_v31, %v1383_v33 }
 0x1db   :  { %2185 = vtanh.f32 %v1428_v16  ;;  %v1293_v43 = vcombine.high %v1271_v10, %v1271_v10  ;;  %v1294_v26 = vcombine.high %v1278_v39, %v1278_v39  ;;  %v1295_v2 = vcombine.high %v1285_v5, %v1285_v5 }
 0x1dc   :  { %v1434_v38 = vadd.f32 %v2786_v47, %v1384_v11  ;;  %2187 = vtanh.f32 %v1429_v14  ;;  %v1296_v41 = vcombine.high %v1292_v12, %v1292_v12  ;;  %v1332_v56 = vrot.slane %v1271_v10, %v2354_v6 }
 0x1dd   :  { %2189 = vtanh.f32 %v1430_v23  ;;  %v1336_v32 = vrot.slane %v1285_v5, %v2354_v6  ;;  %v1340_v20 = vrot.slane %v1293_v43, %v2354_v6  ;;  %v1344_v3 = vrot.slane %v1295_v2, %v2354_v6 }
 0x1de   :  { %v1406_v53 = vmul.f32 %v2714_v37, %v2610_v45  ;;  %2191 = vtanh.f32 %v1431_v50  ;;  %v1348_v7 = vrot.slane %v1278_v39, %v2354_v6  ;;  %v1352_v31 = vrot.slane %v1292_v12, %v2354_v6 }
 0x1df   :  { %2193 = vtanh.f32 %v1432_v17  ;;  %v1356_v47 = vrot.slane %v1294_v26, %v2354_v6  ;;  %v1385_v52 = vsub.f32 %v1332_v56, %v2804_v48  ;;  %v1386_v10 = vsub.f32 %v1336_v32, %v2804_v48 }
 0x1e0   :  { %v1407_v5 = vmul.f32 %v2714_v37, %v2596_v54  ;;  %2195 = vtanh.f32 %v1433_v30  ;;  %v1387_v24 = vsub.f32 %v1340_v20, %v2804_v48  ;;  %v1388_v45 = vsub.f32 %v1344_v3, %v2804_v48 }
 0x1e1   :  { %v1408_v39 = vmul.f32 %v2714_v37, %v2643_v49  ;;  %2197 = vtanh.f32 %v1434_v38  ;;  %v1360_v40 = vrot.slane %v1296_v41, %v2354_v6  ;;  %v1389_v13 = vsub.f32 %v1348_v7, %v2804_v48  ;;  %v3050_v41 = vld [vmem:[#allocation8_spill] sm:$0xff] }
 0x1e2   :  { %v1422_v44 = vadd.f32 %v2718_v63, %v2759_v36  ;;  %v1390_v54 = vsub.f32 %v1352_v31, %v2804_v48  ;;  %v1435_v35 = vadd.f32 %v2755_v9, %v1385_v52  ;;  %v1436_v46 = vadd.f32 %v2768_v1, %v1386_v10  ;;  %v2888_v52 = vpop.f32.mrf.mxu1  ;;  %v3052_v10 = vld [vmem:[#allocation9_spill] sm:$0xff] }
 0x1e3   :  { %v1423_v12 = vadd.f32 %v2718_v63, %v1406_v53  ;;  %v1409_v49 = vmul.f32 %v2714_v37, %v2625_v58  ;;  %v1391_v18 = vsub.f32 %v1356_v47, %v2804_v48  ;;  %v1437_v6 = vadd.f32 %v2735_v34, %v1387_v24  ;;  %v3051_v53 = vld [vmem:[#allocation10_spill] sm:$0xff] }
 0x1e4   :  { %v1424_v15 = vadd.f32 %v2718_v63, %v1407_v5  ;;  %v1438_v36 = vadd.f32 %v1422_v44, %v1388_v45  ;;  %v1425_v55 = vadd.f32 %v2718_v63, %v1408_v39  ;;  %v1392_v9 = vsub.f32 %v1360_v40, %v2804_v48 }
 0x1e5   :  { %v1439_v61 = vadd.f32 %v1423_v12, %v1389_v13  ;;  %2199 = vtanh.f32 %v1435_v35  ;;  %v1426_v51 = vadd.f32 %v2718_v63, %v1409_v49  ;;  %v1588_v59 = vstv %s2849_s29  ;;  %v2095_v35 = vpop.f32.mrf.mxu1 }
 0x1e6   :  { %v2184_v1 = vpop.eup %2183  ;;  %v1440_v4 = vadd.f32 %v1424_v15, %v1390_v54  ;;  %2201 = vtanh.f32 %v1436_v46  ;;  %v1441_v58 = vadd.f32 %v1425_v55, %v1391_v18  ;;  %v2874_v16 = vstv %s2043_s30 }
 0x1e7   :  { %2203 = vtanh.f32 %v1437_v6  ;;  %v1459_v37 = vmul.f32 %v2184_v1, %v2515_v29  ;;  %v1442_v42 = vadd.f32 %v1426_v51, %v1392_v9  ;;  %v2881_v23 = vmul.f32 %v1588_v59, %v2772_v60 }
 0x1e8   :  { %v2186_v34 = vpop.eup %2185  ;;  %2205 = vtanh.f32 %v1438_v36 }
 0x1e9   :  { %v2188_v27 = vpop.eup %2187  ;;  %2207 = vtanh.f32 %v1439_v61  ;;  %v1460_v48 = vmul.f32 %v2186_v34, %v2572_v21  ;;  %v1475_v19 = vsel %vm79_vm0, %v1459_v37, 0.0 }
 0x1ea   :  { %v2190_v57 = vpop.eup %2189  ;;  %2209 = vtanh.f32 %v1440_v4  ;;  %v1461_v33 = vmul.f32 %v2188_v27, %v2513_v28  ;;  %v1476_v63 = vrot.slane %v1475_v19, 4 }
 0x1eb   :  { %v2192_v14 = vpop.eup %2191  ;;  %2211 = vtanh.f32 %v1441_v58  ;;  %v1462_v50 = vmul.f32 %v2190_v57, %v2558_v62  ;;  %v1482_v11 = vsel %vm79_vm0, %v1460_v48, 0.0 }
 0x1ec   :  { %v2194_v17 = vpop.eup %2193  ;;  %v1463_v30 = vmul.f32 %v2192_v14, %v2604_v8  ;;  %v1477_v43 = vadd.f32 %v1476_v63, %v1475_v19  ;;  %v1483_v26 = vrot.slane %v1482_v11, 4  ;;  %v1489_v2 = vsel %vm79_vm0, %v1461_v33, 0.0 }
 0x1ed   :  { %v2196_v38 = vpop.eup %2195  ;;  %2213 = vtanh.f32 %v1442_v42  ;;  %v1464_v56 = vmul.f32 %v2194_v17, %v3050_v41  ;;  %v1490_v32 = vrot.slane %v1489_v2, 4  ;;  %v1496_v20 = vsel %vm79_vm0, %v1462_v50, 0.0 }
 0x1ee   :  { %v2198_v3 = vpop.eup %2197  ;;  %v1465_v7 = vmul.f32 %v2196_v38, %v3051_v53  ;;  %v1478_v31 = vrot.slane %v1477_v43, 2  ;;  %v1484_v60 = vadd.f32 %v1483_v26, %v1482_v11  ;;  %v1497_v47 = vrot.slane %v1496_v20, 4 }
 0x1ef   :  { %v1466_v5 = vmul.f32 %v2198_v3, %v3052_v10  ;;  %v1491_v24 = vadd.f32 %v1490_v32, %v1489_v2  ;;  %v1503_v45 = vsel %vm79_vm0, %v1463_v30, 0.0  ;;  %v1510_v39 = vsel %vm79_vm0, %v1464_v56, 0.0 }
 0x1f0   :  { %v1479_v40 = vadd.f32 %v1478_v31, %v1477_v43  ;;  %v1485_v13 = vrot.slane %v1484_v60, 2  ;;  %v1498_v44 = vadd.f32 %v1497_v47, %v1496_v20  ;;  %v1504_v54 = vrot.slane %v1503_v45, 4 }
 0x1f1   :  { %v1492_v46 = vrot.slane %v1491_v24, 2  ;;  %v1511_v12 = vrot.slane %v1510_v39, 4  ;;  %v1517_v49 = vsel %vm79_vm0, %v1465_v7, 0.0  ;;  %v1524_v18 = vsel %vm79_vm0, %v1466_v5, 0.0 }
 0x1f2   :  { %v2200_v6 = vpop.eup %2199  ;;  %v1480_v15 = vrot.slane %v1479_v40, 1  ;;  %v1486_v36 = vadd.f32 %v1485_v13, %v1484_v60  ;;  %v1499_v55 = vrot.slane %v1498_v44, 2  ;;  %v1505_v9 = vadd.f32 %v1504_v54, %v1503_v45 }
 0x1f3   :  { %v2202_v61 = vpop.eup %2201  ;;  %v1493_v1 = vadd.f32 %v1492_v46, %v1491_v24  ;;  %v1512_v4 = vadd.f32 %v1511_v12, %v1510_v39  ;;  %v1518_v51 = vrot.slane %v1517_v49, 4  ;;  %v1525_v58 = vrot.slane %v1524_v18, 4 }
 0x1f4   :  { %v2204_v37 = vpop.eup %2203  ;;  %v1481_v34 = vadd.f32 %v1480_v15, %v1479_v40  ;;  %v1487_v27 = vrot.slane %v1486_v36, 1  ;;  %v1500_v42 = vadd.f32 %v1499_v55, %v1498_v44  ;;  %v1506_v48 = vrot.slane %v1505_v9, 2 }
 0x1f5   :  { %v2206_v19 = vpop.eup %2205  ;;  %v1494_v57 = vrot.slane %v1493_v1, 1  ;;  %v1513_v33 = vrot.slane %v1512_v4, 2  ;;  %v1519_v63 = vadd.f32 %v1518_v51, %v1517_v49  ;;  %v1526_v14 = vadd.f32 %v1525_v58, %v1524_v18 }
 0x1f6   :  { %v2208_v50 = vpop.eup %2207  ;;  %v1488_v11 = vadd.f32 %v1487_v27, %v1486_v36  ;;  %v1501_v17 = vrot.slane %v1500_v42, 1  ;;  %v1507_v30 = vadd.f32 %v1506_v48, %v1505_v9  ;;  %v1593_v43 = vmul.f32 %v2874_v16, %v1481_v34 }
 0x1f7   :  { %v2210_v26 = vpop.eup %2209  ;;  %v1495_v2 = vadd.f32 %v1494_v57, %v1493_v1  ;;  %v1514_v38 = vadd.f32 %v1513_v33, %v1512_v4  ;;  %v1520_v56 = vrot.slane %v1519_v63, 2  ;;  %v1527_v32 = vrot.slane %v1526_v14, 2 }
 0x1f8   :  { %v2212_v20 = vpop.eup %2211  ;;  %v1502_v3 = vadd.f32 %v1501_v17, %v1500_v42  ;;  %v1508_v7 = vrot.slane %v1507_v30, 1  ;;  %v1594_v31 = vmul.f32 %v2874_v16, %v1488_v11  ;;  %v1467_v60 = vmul.f32 %v2200_v6, %v2515_v29 }
 0x1f9   :  { %v1515_v47 = vrot.slane %v1514_v38, 1  ;;  %v1521_v5 = vadd.f32 %v1520_v56, %v1519_v63  ;;  %v1528_v24 = vadd.f32 %v1527_v32, %v1526_v14  ;;  %v1595_v45 = vmul.f32 %v2874_v16, %v1495_v2 }
 0x1fa   :  { %v2214_v39 = vpop.eup %2213  ;;  %v1509_v40 = vadd.f32 %v1508_v7, %v1507_v30  ;;  %v1596_v13 = vmul.f32 %v2874_v16, %v1502_v3  ;;  %v1625_v44 = vsel %vm796_vm4, %v1594_v31, %v1593_v43  ;;  %v1468_v54 = vmul.f32 %v2202_v61, %v2572_v21 }
 0x1fb   :  { %v1516_v35 = vadd.f32 %v1515_v47, %v1514_v38  ;;  %v1522_v46 = vrot.slane %v1521_v5, 1  ;;  %v1529_v12 = vrot.slane %v1528_v24, 1  ;;  %v1626_v49 = vsel %vm798_vm5, %v1595_v45, %v1625_v44 }
 0x1fc   :  { %v1597_v29 = vmul.f32 %v2874_v16, %v1509_v40  ;;  %v1627_v18 = vsel %vm800_vm6, %v1596_v13, %v1626_v49  ;;  %v1469_v6 = vmul.f32 %v2204_v37, %v2513_v28  ;;  %v1470_v15 = vmul.f32 %v2206_v19, %v2558_v62 }
 0x1fd   :  { %v1523_v36 = vadd.f32 %v1522_v46, %v1521_v5  ;;  %v1530_v55 = vadd.f32 %v1529_v12, %v1528_v24  ;;  %v1598_v9 = vmul.f32 %v2874_v16, %v1516_v35  ;;  %v1471_v1 = vmul.f32 %v2208_v50, %v2604_v8 }
 0x1fe   :  { %v1628_v21 = vsel %vm802_vm7, %v1597_v29, %v1627_v18  ;;  %v1472_v61 = vmul.f32 %v2210_v26, %v3050_v41  ;;  %v1473_v4 = vmul.f32 %v2212_v20, %v3051_v53  ;;  %v1474_v51 = vmul.f32 %v2214_v39, %v3052_v10 }
 0x1ff   :  { %v1599_v58 = vmul.f32 %v2874_v16, %v1523_v36  ;;  %v1600_v28 = vmul.f32 %v2874_v16, %v1530_v55  ;;  %v1629_v62 = vsel %vm804_vm8, %v1598_v9, %v1628_v21  ;;  %v1531_v37 = vsel %vm79_vm0, %v1467_v60, 0.0 }
 0x200   :  { %v1532_v34 = vrot.slane %v1531_v37, 4  ;;  %v1538_v27 = vsel %vm79_vm0, %v1468_v54, 0.0  ;;  %v1545_v8 = vsel %vm79_vm0, %v1469_v6, 0.0  ;;  %v1552_v42 = vsel %vm79_vm0, %v1470_v15, 0.0 }
 0x201   :  { %v1630_v41 = vsel %vm806_vm9, %v1599_v58, %v1629_v62  ;;  %v1539_v53 = vrot.slane %v1538_v27, 4  ;;  %v1546_v48 = vrot.slane %v1545_v8, 4  ;;  %v1553_v10 = vrot.slane %v1552_v42, 4 }
 0x202   :  { %v1631_v19 = vsel %vm808_vm10, %v1600_v28, %v1630_v41  ;;  %v1533_v57 = vadd.f32 %v1532_v34, %v1531_v37  ;;  %v1559_v33 = vsel %vm79_vm0, %v1471_v1, 0.0  ;;  %v1566_v63 = vsel %vm79_vm0, %v1472_v61, 0.0 }
 0x203   :  { %v1641_v14 = vadd.f32 %v1631_v19, %v2881_v23  ;;  %v1540_v50 = vadd.f32 %v1539_v53, %v1538_v27  ;;  %v1547_v11 = vadd.f32 %v1546_v48, %v1545_v8  ;;  %v1554_v17 = vadd.f32 %v1553_v10, %v1552_v42 }
 0x204   :  { %v1534_v30 = vrot.slane %v1533_v57, 2  ;;  %v1560_v43 = vrot.slane %v1559_v33, 4  ;;  %v1567_v26 = vrot.slane %v1566_v63, 4  ;;  %v1573_v2 = vsel %vm79_vm0, %v1473_v4, 0.0 }
 0x205   :  { %vm1643_vm14 = vcmp.ge.f32.partialorder %v1641_v14, 0.0  ;;  %v1645_v38 = vmul.f32 0.01, %v1641_v14  ;;  %v1541_v56 = vrot.slane %v1540_v50, 2  ;;  %v1548_v32 = vrot.slane %v1547_v11, 2 }
 0x206   :  { %v1535_v20 = vadd.f32 %v1534_v30, %v1533_v57  ;;  %v1555_v3 = vrot.slane %v1554_v17, 2  ;;  %v1561_v7 = vadd.f32 %v1560_v43, %v1559_v33  ;;  %v1568_v31 = vadd.f32 %v1567_v26, %v1566_v63 }
 0x207   :  { %v1647_v60 = vsel %vm1643_vm14, %v1641_v14, %v1645_v38  ;;  %v1542_v47 = vadd.f32 %v1541_v56, %v1540_v50  ;;  %v1549_v5 = vadd.f32 %v1548_v32, %v1547_v11  ;;  %v1574_v23 = vrot.slane %v1573_v2, 4 }
 0x208   :  { %2125 = vmatprep.mubr.msk.f32.mxu0 %vm79_vm0, %v1647_v60  ;;  %v1536_v24 = vrot.slane %v1535_v20, 1  ;;  %v1556_v45 = vadd.f32 %v1555_v3, %v1554_v17  ;;  %v1562_v39 = vrot.slane %v1561_v7, 2  ;;  %v1569_v40 = vrot.slane %v1568_v31, 2 }
 0x209   :  { %v1543_v13 = vrot.slane %v1542_v47, 1  ;;  %v1550_v44 = vrot.slane %v1549_v5, 1  ;;  %v1575_v54 = vadd.f32 %v1574_v23, %v1573_v2  ;;  %v1580_v35 = vsel %vm79_vm0, %v1474_v51, 0.0 }
 0x20a   :  { %v1537_v46 = vadd.f32 %v1536_v24, %v1535_v20  ;;  %v1557_v12 = vrot.slane %v1556_v45, 1  ;;  %v1563_v49 = vadd.f32 %v1562_v39, %v1561_v7  ;;  %v1570_v29 = vadd.f32 %v1569_v40, %v1568_v31 }
 0x20b   :  { %v1544_v18 = vadd.f32 %v1543_v13, %v1542_v47  ;;  %v1551_v6 = vadd.f32 %v1550_v44, %v1549_v5  ;;  %v1576_v15 = vrot.slane %v1575_v54, 2  ;;  %v1581_v36 = vrot.slane %v1580_v35, 4  ;;  %v2247_v44 = vld [vmem:[%s3032_s2 + $0x8] sm:$0xff] }
 0x20c   :  { %v1558_v55 = vadd.f32 %v1557_v12, %v1556_v45  ;;  %v1564_v9 = vrot.slane %v1563_v49, 1  ;;  %v1571_v1 = vrot.slane %v1570_v29, 1  ;;  %v1601_v21 = vmul.f32 %v2874_v16, %v1537_v46 }
 0x20d   :  { %v1577_v61 = vadd.f32 %v1576_v15, %v1575_v54  ;;  %v1582_v4 = vadd.f32 %v1581_v36, %v1580_v35  ;;  %v1602_v58 = vmul.f32 %v2874_v16, %v1544_v18  ;;  %v1603_v28 = vmul.f32 %v2874_v16, %v1551_v6 }
 0x20e   :  { %v1565_v51 = vadd.f32 %v1564_v9, %v1563_v49  ;;  %v1572_v62 = vadd.f32 %v1571_v1, %v1570_v29  ;;  %v1604_v37 = vmul.f32 %v2874_v16, %v1558_v55  ;;  %v1590_v30 = vmul.f32 %v1588_v59, %v2774_v0 }
 0x20f   :  { %v1578_v34 = vrot.slane %v1577_v61, 1  ;;  %v1583_v27 = vrot.slane %v1582_v4, 2  ;;  %v1632_v8 = vsel %vm796_vm4, %v1602_v58, %v1601_v21  ;;  %v227_v54 = vmul.f32 %v2247_v44, %v2247_v44 }
 0x210   :  { %v1605_v42 = vmul.f32 %v2874_v16, %v1565_v51  ;;  %v1633_v41 = vsel %vm798_vm5, %v1603_v28, %v1632_v8  ;;  %v1606_v10 = vmul.f32 %v2874_v16, %v1572_v62 }
 0x211   :  { %v1579_v53 = vadd.f32 %v1578_v34, %v1577_v61  ;;  %v1584_v48 = vadd.f32 %v1583_v27, %v1582_v4  ;;  %v1634_v19 = vsel %vm800_vm6, %v1604_v37, %v1633_v41  ;;  %v231_v12 = vsel %vm79_vm0, %v227_v54, 0.0 }
 0x212   :  { %v1635_v57 = vsel %vm802_vm7, %v1605_v42, %v1634_v19  ;;  %232 = vadd.xlane.f32.xlu1 %v231_v12 }
 0x213   :  { %v1585_v33 = vrot.slane %v1584_v48, 1  ;;  %v1607_v63 = vmul.f32 %v2874_v16, %v1579_v53  ;;  %v1636_v14 = vsel %vm804_vm8, %v1606_v10, %v1635_v57 }
 0x215   :  { %v1586_v50 = vadd.f32 %v1585_v33, %v1584_v48  ;;  %v1637_v11 = vsel %vm806_vm9, %v1607_v63, %v1636_v14 }
 0x217   :  { %v1608_v17 = vmul.f32 %v2874_v16, %v1586_v50 }
 0x219   :  { %v1638_v43 = vsel %vm808_vm10, %v1608_v17, %v1637_v11 }
 0x21a   :  { %v1642_v26 = vadd.f32 %v1638_v43, %v1590_v30 }
 0x21c   :  { %vm1644_vm4 = vcmp.ge.f32.partialorder %v1642_v26, 0.0  ;;  %v1646_v2 = vmul.f32 0.01, %v1642_v26 }
 0x21e   :  { %v1648_v38 = vsel %vm1644_vm4, %v1642_v26, %v1646_v2 }
 0x21f   :  { %2126 = vmatmul.mubr.msk.f32.vlgmr.msra.gmra.mxu0 %vm79_vm0, %v1648_v38 }
 0x258   :  { %v1115_v0 = vpop.xlane.xlu0 %1114 }
 0x259   :  { %2215 = vrsqrt.f32 %v1115_v0  ;;  %vm1121_vm5 = vcmp.eq.f32.partialorder %v1115_v0, inf  ;;  %v1124_v1 = vand.u32 2147483648, %v1115_v0  ;;  %vm1123_vm7 = vcmp.eq.f32.partialorder %v1115_v0, 0.0 }
 0x25c   :  { %v1118_v39 = vpop.xlane.xlu0 %1117 }
 0x25d   :  { %2217 = vrsqrt.f32 %v1118_v39  ;;  %vm1128_vm9 = vcmp.eq.f32.partialorder %v1118_v39, inf  ;;  %v1131_v27 = vand.u32 2147483648, %v1118_v39  ;;  %vm1130_vm15 = vcmp.eq.f32.partialorder %v1118_v39, 0.0 }
 0x266   :  { %v2216_v18 = vpop.eup %2215 }
 0x267   :  { %v1120_v6 = vmul.f32 %v2216_v18, %v1115_v0  ;;  %v249_v18 = vmul.f32 %v2684_v22, %v2888_v52 }
 0x269   :  { %v1122_v55 = vsel %vm1121_vm5, %v1115_v0, %v1120_v6 }
 0x26a   :  { %v2218_v15 = vpop.eup %2217  ;;  %v1125_v58 = vsel %vm1123_vm7, %v1124_v1, %v1122_v55 }
 0x26b   :  { %v1127_v21 = vmul.f32 %v2218_v15, %v1118_v39 }
 0x26d   :  { %v1129_v37 = vsel %vm1128_vm9, %v1118_v39, %v1127_v21 }
 0x26e   :  { %v1132_v53 = vsel %vm1130_vm15, %v1131_v27, %v1129_v37 }
 0x28f   :  { %v2947_v56 = vpop.f32.mrf.mxu1 }
 0x290   :  { %v1133_v32 = vmul.f32 %v2684_v22, %v2947_v56 }
 0x291   :  { %v2111_v20 = vpop.f32.mrf.mxu1 }
 0x292   :  { %v1135_v3 = vsel %vm250_vm13, %v1133_v32, 0.0 }
 0x293   :  { %v1136_v16 = vrot.slane %v1135_v3, 4 }
 0x294   :  { %v2952_v7 = vpop.f32.mrf.mxu1 }
 0x295   :  { %v1137_v59 = vadd.f32 %v1136_v16, %v1135_v3  ;;  %v1134_v31 = vmul.f32 %v2684_v22, %v2952_v7 }
 0x296   :  { %v2116_v60 = vpop.f32.mrf.mxu1 }
 0x297   :  { %v1138_v47 = vrot.slane %v1137_v59, 2  ;;  %v1142_v5 = vsel %vm250_vm13, %v1134_v31, 0.0 }
 0x298   :  { %v1143_v23 = vrot.slane %v1142_v5, 4 }
 0x299   :  { %v1139_v24 = vadd.f32 %v1138_v47, %v1137_v59 }
 0x29a   :  { %v1144_v45 = vadd.f32 %v1143_v23, %v1142_v5 }
 0x29b   :  { %v1140_v40 = vrot.slane %v1139_v24, 1 }
 0x29c   :  { %v1145_v13 = vrot.slane %v1144_v45, 2 }
 0x29d   :  { %v1141_v35 = vadd.f32 %v1140_v40, %v1139_v24 }
 0x29e   :  { %v1146_v46 = vadd.f32 %v1145_v13, %v1144_v45 }
 0x29f   :  { %2219 = vrsqrt.f32 %v1141_v35  ;;  %vm1151_vm6 = vcmp.eq.f32.partialorder %v1141_v35, inf  ;;  %v1154_v61 = vand.u32 2147483648, %v1141_v35  ;;  %vm1153_vm8 = vcmp.eq.f32.partialorder %v1141_v35, 0.0 }
 0x2a0   :  { %v1147_v49 = vrot.slane %v1146_v46, 1 }
 0x2a2   :  { %v1148_v29 = vadd.f32 %v1147_v49, %v1146_v46 }
 0x2a4   :  { %2221 = vrsqrt.f32 %v1148_v29  ;;  %vm1158_vm10 = vcmp.eq.f32.partialorder %v1148_v29, inf  ;;  %v1161_v42 = vand.u32 2147483648, %v1148_v29  ;;  %vm1160_vm2 = vcmp.eq.f32.partialorder %v1148_v29, 0.0 }
 0x2ac   :  { %v2220_v36 = vpop.eup %2219 }
 0x2ad   :  { %v1150_v9 = vmul.f32 %v2220_v36, %v1141_v35  ;;  %v258_v36 = vsel %vm250_vm13, %v249_v18, 0.0 }
 0x2ae   :  { %v259_v1 = vrot.slane %v258_v36, 4 }
 0x2af   :  { %v1152_v4 = vsel %vm1151_vm6, %v1141_v35, %v1150_v9 }
 0x2b0   :  { %v1155_v28 = vsel %vm1153_vm8, %v1154_v61, %v1152_v4  ;;  %v260_v21 = vadd.f32 %v259_v1, %v258_v36 }
 0x2b1   :  { %v2222_v51 = vpop.eup %2221  ;;  %v1163_v62 = vmul.f32 %v1155_v28, %v1125_v58  ;;  %v2051_v28 = vld [vmem:[%s3035_s5 + $0x1] ss:$0 sm:$0xff] }
 0x2b2   :  { %v1157_v34 = vmul.f32 %v2222_v51, %v1148_v29  ;;  %v261_v61 = vrot.slane %v260_v21, 2 }
 0x2b3   :  { %v1165_v8 = vadd.f32 1e-06, %v1163_v62 }
 0x2b4   :  { %v1159_v41 = vsel %vm1158_vm10, %v1148_v29, %v1157_v34  ;;  %v262_v4 = vadd.f32 %v261_v61, %v260_v21  ;;  %v2053_v34 = vld [vmem:[%s3036_s6 + $0x1] ss:$0 sm:$0xff] }
 0x2b5   :  { %2223 = vrcp.f32 %v1165_v8  ;;  %v1162_v48 = vsel %vm1160_vm2, %v1161_v42, %v1159_v41 }
 0x2b6   :  { %v1164_v10 = vmul.f32 %v1162_v48, %v1132_v53  ;;  %v263_v37 = vrot.slane %v262_v4, 1 }
 0x2b8   :  { %v1166_v19 = vadd.f32 1e-06, %v1164_v10  ;;  %v264_v53 = vadd.f32 %v263_v37, %v262_v4 }
 0x2ba   :  { %2225 = vrcp.f32 %v1166_v19  ;;  %vm274_vm12 = vcmp.eq.f32.partialorder %v264_v53, inf  ;;  %vm276_vm14 = vcmp.eq.f32.partialorder %v264_v53, 0.0 }
 0x2c2   :  { %v2224_v57 = vpop.eup %2223 }
 0x2c3   :  { %v1169_v33 = vmul.f32 %v2224_v57, %v2947_v56 }
 0x2c5   :  { %v1171_v63 = vsub.f32 1.0, %v1169_v33  ;;  %v1173_v14 = vmax.f32 %v1169_v33, 0.0 }
 0x2c7   :  { %v2226_v50 = vpop.eup %2225  ;;  %v1174_v11 = vmax.f32 %v1171_v63, 0.0  ;;  %v1177_v17 = vmin.f32 %v1173_v14, 1.0 }
 0x2c8   :  { %v1170_v30 = vmul.f32 %v2226_v50, %v2952_v7 }
 0x2c9   :  { %v1178_v43 = vmin.f32 %v1174_v11, 1.0  ;;  %2034 = vst.msk [vmem:[%s3037_s7 + $0x20] sm:$0xff] %vm250_vm13, %v1177_v17  ;;  %v233_v11 = vpop.xlane.xlu1 %232 }
 0x2ca   :  { %v1172_v26 = vsub.f32 1.0, %v1170_v30  ;;  %v1175_v2 = vmax.f32 %v1170_v30, 0.0  ;;  %vm243_vm4 = vcmp.eq.f32.partialorder %v233_v11, inf  ;;  %vm245_vm5 = vcmp.eq.f32.partialorder %v233_v11, 0.0 }
 0x2cb   :  { %2035 = vst.msk [vmem:[%s3037_s7 + $0x28] sm:$0xff] %vm250_vm13, %v1178_v43  ;;  %v277_v43 = vand.u32 2147483648, %v264_v53 }
 0x2cc   :  { %v1176_v38 = vmax.f32 %v1172_v26, 0.0  ;;  %v1179_v56 = vmin.f32 %v1175_v2, 1.0 }
 0x2ce   :  { %v1180_v32 = vmin.f32 %v1176_v38, 1.0  ;;  %2036 = vst.msk [vmem:[%s3037_s7 + $0x30] sm:$0xff] %vm250_vm13, %v1179_v56  ;;  %v246_v38 = vand.u32 2147483648, %v233_v11 }
 0x2d0   :  { %2037 = vst.msk [vmem:[%s3037_s7 + $0x38] sm:$0xff] %vm250_vm13, %v1180_v32 }
 0x2df   :  { %v2127_v20 = vpop.f32.mrf.mxu0 }
 0x2e0   :  { %v1736_v16 = vsel %vm79_vm0, %v2127_v20, 0.0 }
 0x2e1   :  { %v1726_v3 = vpop.f32.mrf.mxu0 }
 0x2e2   :  { %v1735_v7 = vsel %vm79_vm0, %v1726_v3, 0.0 }
 0x2e3   :  { %v1737_v0 = vadd.f32 %v1736_v16, %v1735_v7 }
 0x2e5   :  { %v1738_v59 = vrot.slane %v1737_v0, 4 }
 0x2e7   :  { %v1739_v31 = vadd.f32 %v1738_v59, %v1737_v0 }
 0x2e9   :  { %v1740_v60 = vrot.slane %v1739_v31, 2 }
 0x2eb   :  { %v1741_v47 = vadd.f32 %v1740_v60, %v1739_v31 }
 0x2ed   :  { %v1742_v5 = vrot.slane %v1741_v47, 1 }
 0x2ef   :  { %v1743_v23 = vadd.f32 %v1742_v5, %v1741_v47 }
 0x2f1   :  { %v1744_v24 = vmul.f32 0.0625, %v1743_v23 }
 0x2f3   :  { %v1745_v45 = vsub.f32 %v1726_v3, %v1744_v24  ;;  %v1746_v39 = vsub.f32 %v2127_v20, %v1744_v24 }
 0x2f5   :  { %v1747_v40 = vmul.f32 %v1745_v45, %v1745_v45  ;;  %v1748_v13 = vmul.f32 %v1746_v39, %v1746_v39 }
 0x2f7   :  { %v1749_v44 = vsel %vm79_vm0, %v1747_v40, 0.0  ;;  %v1750_v54 = vsel %vm79_vm0, %v1748_v13, 0.0 }
 0x2f8   :  { %v1751_v35 = vadd.f32 %v1750_v54, %v1749_v44 }
 0x2fa   :  { %v1752_v46 = vrot.slane %v1751_v35, 4 }
 0x2fc   :  { %v1753_v12 = vadd.f32 %v1752_v46, %v1751_v35 }
 0x2fe   :  { %v1754_v49 = vrot.slane %v1753_v12, 2 }
 0x300   :  { %v1755_v29 = vadd.f32 %v1754_v49, %v1753_v12 }
 0x302   :  { %v1756_v6 = vrot.slane %v1755_v29, 1 }
 0x304   :  { %v1757_v15 = vadd.f32 %v1756_v6, %v1755_v29 }
 0x306   :  { %v1758_v55 = vmul.f32 0.0625, %v1757_v15 }
 0x308   :  { %v1759_v9 = vadd.f32 1e-05, %v1758_v55 }
 0x30a   :  { %2227 = vrsqrt.f32 %v1759_v9 }
 0x30b   :  { %2229 = vrsqrt.f32 %v264_v53 }
 0x30c   :  { %2231 = vrsqrt.f32 %v233_v11 }
 0x317   :  { %v2228_v58 = vpop.eup %2227 }
 0x318   :  { %v1761_v51 = vmul.f32 %v2228_v58, %v1745_v45  ;;  %v1762_v62 = vmul.f32 %v2228_v58, %v1746_v39  ;;  %v2230_v17 = vpop.eup %2229 }
 0x319   :  { %v273_v30 = vmul.f32 %v2230_v17, %v264_v53  ;;  %v2232_v2 = vpop.eup %2231 }
 0x31a   :  { %v1771_v27 = vmul.f32 %v2051_v28, %v1761_v51  ;;  %v1772_v8 = vmul.f32 %v2051_v28, %v1762_v62  ;;  %v242_v56 = vmul.f32 %v2232_v2, %v233_v11 }
 0x31b   :  { %v275_v26 = vsel %vm274_vm12, %v264_v53, %v273_v30 }
 0x31c   :  { %v1781_v42 = vadd.f32 %v2053_v34, %v1771_v27  ;;  %v1782_v41 = vadd.f32 %v2053_v34, %v1772_v8  ;;  %v278_v32 = vsel %vm276_vm14, %v277_v43, %v275_v26  ;;  %v244_v20 = vsel %vm243_vm4, %v233_v11, %v242_v56 }
 0x31d   :  { %v247_v3 = vsel %vm245_vm5, %v246_v38, %v244_v20 }
 0x31e   :  { %vm1783_vm3 = vcmp.ge.f32.partialorder %v1781_v42, 0.0  ;;  %v1785_v48 = vmul.f32 0.01, %v1781_v42  ;;  %vm1784_vm11 = vcmp.ge.f32.partialorder %v1782_v41, 0.0  ;;  %v1786_v10 = vmul.f32 0.01, %v1782_v41 }
 0x31f   :  { %v280_v16 = vmul.f32 %v278_v32, %v247_v3 }
 0x320   :  { %v1787_v19 = vsel %vm1783_vm3, %v1781_v42, %v1785_v48  ;;  %v1788_v57 = vsel %vm1784_vm11, %v1782_v41, %v1786_v10 }
 0x321   :  { %2129 = vmatpush3.xpose.msk.msra.mxu1 %vm79_vm0, %v1787_v19  ;;  %v1935_v33 = vmul.f32 %v1787_v19, %v1787_v19  ;;  %v1936_v63 = vmul.f32 %v1788_v57, %v1788_v57 }
 0x322   :  { %2133 = vmatprep.subr.mxu1 %v3049_v25 }
 0x323   :  { %v1937_v14 = vsel %vm79_vm0, %v1935_v33, 0.0  ;;  %v1940_v50 = vsel %vm79_vm0, %v1936_v63, 0.0 }
 0x324   :  { %1938 = vadd.xlane.f32.xlu1 %v1937_v14  ;;  %1941 = vadd.xlane.f32.xlu0 %v1940_v50 }
 0x325   :  { %2131 = vmatmul.mubr.msk.f32.vlgmr.msra.gmra.mxu1 %vm79_vm0, %v1787_v19 }
 0x326   :  { %2134 = vmatpush3.xpose.msk.msra.mxu1 %vm79_vm0, %v1788_v57  ;;  %2135 = vmatprep.mubr.msk.f32.mxu1 %vm2279_vm1, %v3049_v25  ;;  %v282_v25 = vadd.f32 1e-06, %v280_v16 }
 0x328   :  { %2233 = vrcp.f32 %v282_v25 }
 0x329   :  { %2136 = vmatmul.mubr.msk.f32.vlgmr.msra.gmra.mxu1 %vm79_vm0, %v1788_v57 }
 0x335   :  { %v2234_v7 = vpop.eup %2233 }
 0x336   :  { %v286_v0 = vmul.f32 %v2234_v7, %v2888_v52 }
 0x338   :  { %v288_v59 = vsub.f32 1.0, %v286_v0  ;;  %v291_v31 = vmax.f32 %v286_v0, 0.0 }
 0x33a   :  { %v292_v60 = vmax.f32 %v288_v59, 0.0  ;;  %v295_v47 = vmin.f32 %v291_v31, 1.0 }
 0x33c   :  { %v296_v5 = vmin.f32 %v292_v60, 1.0  ;;  %299 = vst.msk [vmem:[%s3037_s7 + $0x10] sm:$0xff] %vm250_vm13, %v295_v47 }
 0x33e   :  { %300 = vst.msk [vmem:[%s3037_s7 + $0x18] sm:$0xff] %vm250_vm13, %v296_v5 }
 0x3ad   :  { %v1939_v35 = vpop.xlane.xlu1 %1938  ;;  %v1942_v6 = vpop.xlane.xlu0 %1941 }
 0x3ae   :  { %2235 = vrsqrt.f32 %v1939_v35  ;;  %vm1945_vm0 = vcmp.eq.f32.partialorder %v1939_v35, inf  ;;  %v1948_v62 = vand.u32 2147483648, %v1939_v35  ;;  %vm1947_vm6 = vcmp.eq.f32.partialorder %v1939_v35, 0.0 }
 0x3af   :  { %2237 = vrsqrt.f32 %v1942_v6  ;;  %vm1952_vm8 = vcmp.eq.f32.partialorder %v1942_v6, inf  ;;  %v1955_v19 = vand.u32 2147483648, %v1942_v6  ;;  %vm1954_vm10 = vcmp.eq.f32.partialorder %v1942_v6, 0.0 }
 0x3e5   :  { %v1858_v23 = vpop.f32.mrf.mxu1 }
 0x3e6   :  { %v1957_v24 = vmul.f32 %v2684_v22, %v1858_v23 }
 0x3e7   :  { %v2132_v45 = vpop.f32.mrf.mxu1 }
 0x3e8   :  { %v1959_v52 = vsel %vm250_vm13, %v1957_v24, 0.0 }
 0x3e9   :  { %v1960_v39 = vrot.slane %v1959_v52, 4  ;;  %v1931_v40 = vpop.f32.mrf.mxu1 }
 0x3ea   :  { %v1958_v13 = vmul.f32 %v2684_v22, %v1931_v40  ;;  %v2236_v22 = vpop.eup %2235 }
 0x3eb   :  { %v1961_v44 = vadd.f32 %v1960_v39, %v1959_v52  ;;  %v2137_v54 = vpop.f32.mrf.mxu1  ;;  %v1944_v61 = vmul.f32 %v2236_v22, %v1939_v35  ;;  %v2238_v4 = vpop.eup %2237 }
 0x3ec   :  { %v1966_v46 = vsel %vm250_vm13, %v1958_v13, 0.0  ;;  %v1951_v37 = vmul.f32 %v2238_v4, %v1942_v6 }
 0x3ed   :  { %v1962_v12 = vrot.slane %v1961_v44, 2  ;;  %v1967_v49 = vrot.slane %v1966_v46, 4  ;;  %v1946_v28 = vsel %vm1945_vm0, %v1939_v35, %v1944_v61 }
 0x3ee   :  { %v1949_v8 = vsel %vm1947_vm6, %v1948_v62, %v1946_v28  ;;  %v1953_v48 = vsel %vm1952_vm8, %v1942_v6, %v1951_v37 }
 0x3ef   :  { %v1963_v29 = vadd.f32 %v1962_v12, %v1961_v44  ;;  %v1968_v18 = vadd.f32 %v1967_v49, %v1966_v46  ;;  %v1956_v14 = vsel %vm1954_vm10, %v1955_v19, %v1953_v48 }
 0x3f1   :  { %v1964_v15 = vrot.slane %v1963_v29, 1  ;;  %v1969_v36 = vrot.slane %v1968_v18, 2 }
 0x3f3   :  { %v1965_v55 = vadd.f32 %v1964_v15, %v1963_v29  ;;  %v1970_v9 = vadd.f32 %v1969_v36, %v1968_v18 }
 0x3f5   :  { %2239 = vrsqrt.f32 %v1965_v55  ;;  %v1971_v1 = vrot.slane %v1970_v9, 1  ;;  %vm1975_vm1 = vcmp.eq.f32.partialorder %v1965_v55, inf  ;;  %v1978_v34 = vand.u32 2147483648, %v1965_v55 }
 0x3f6   :  { %vm1977_vm7 = vcmp.eq.f32.partialorder %v1965_v55, 0.0 }
 0x3f7   :  { %v1972_v21 = vadd.f32 %v1971_v1, %v1970_v9 }
 0x3f9   :  { %2241 = vrsqrt.f32 %v1972_v21  ;;  %vm1982_vm9 = vcmp.eq.f32.partialorder %v1972_v21, inf  ;;  %v1985_v33 = vand.u32 2147483648, %v1972_v21  ;;  %vm1984_vm15 = vcmp.eq.f32.partialorder %v1972_v21, 0.0 }
 0x402   :  { %v2240_v58 = vpop.eup %2239 }
 0x403   :  { %v1974_v51 = vmul.f32 %v2240_v58, %v1965_v55 }
 0x405   :  { %v1976_v27 = vsel %vm1975_vm1, %v1965_v55, %v1974_v51 }
 0x406   :  { %v1979_v42 = vsel %vm1977_vm7, %v1978_v34, %v1976_v27  ;;  %v2242_v41 = vpop.eup %2241 }
 0x407   :  { %v1987_v53 = vmul.f32 %v1979_v42, %v1949_v8  ;;  %v1981_v10 = vmul.f32 %v2242_v41, %v1972_v21 }
 0x409   :  { %v1989_v57 = vadd.f32 1e-06, %v1987_v53  ;;  %v1983_v63 = vsel %vm1982_vm9, %v1972_v21, %v1981_v10 }
 0x40a   :  { %v1986_v50 = vsel %vm1984_vm15, %v1985_v33, %v1983_v63 }
 0x40b   :  { %2243 = vrcp.f32 %v1989_v57  ;;  %v1988_v11 = vmul.f32 %v1986_v50, %v1956_v14 }
 0x40d   :  { %v1990_v17 = vadd.f32 1e-06, %v1988_v11 }
 0x40f   :  { %2245 = vrcp.f32 %v1990_v17 }
 0x418   :  { %v2244_v30 = vpop.eup %2243 }
 0x419   :  { %v1993_v43 = vmul.f32 %v2244_v30, %v1858_v23 }
 0x41b   :  { %v1995_v26 = vsub.f32 1.0, %v1993_v43  ;;  %v1997_v2 = vmax.f32 %v1993_v43, 0.0 }
 0x41c   :  { %v2246_v38 = vpop.eup %2245 }
 0x41d   :  { %v1998_v56 = vmax.f32 %v1995_v26, 0.0  ;;  %v2001_v32 = vmin.f32 %v1997_v2, 1.0  ;;  %v1994_v20 = vmul.f32 %v2246_v38, %v1931_v40 }
 0x41f   :  { %v2002_v3 = vmin.f32 %v1998_v56, 1.0  ;;  %2058 = vst.msk [vmem:[%s3037_s7 + $0x40] sm:$0xff] %vm250_vm13, %v2001_v32  ;;  %v1996_v16 = vsub.f32 1.0, %v1994_v20  ;;  %v1999_v25 = vmax.f32 %v1994_v20, 0.0 }
 0x421   :  { %2059 = vst.msk [vmem:[%s3037_s7 + $0x48] sm:$0xff] %vm250_vm13, %v2002_v3  ;;  %v2000_v7 = vmax.f32 %v1996_v16, 0.0  ;;  %v2003_v0 = vmin.f32 %v1999_v25, 1.0 }
 0x423   :  { %v2004_v59 = vmin.f32 %v2000_v7, 1.0  ;;  %2060 = vst.msk [vmem:[%s3037_s7 + $0x50] sm:$0xff] %vm250_vm13, %v2003_v0 }
 0x425   :  { %2061 = vst.msk [vmem:[%s3037_s7 + $0x58] sm:$0xff] %vm250_vm13, %v2004_v59 }
 0x426   :  { %2014 = vsyncpa [#allocation3], 1 }
 0x427   :  { %2015 = vsyncpa [#allocation5], 1 }

</bundles_post_ra>
